<compile_context>
chip_gen: v5e
topology: v5e:2x2
jax: 0.10.0
libtpu: 0.0.40
codegen_flags: <defaults>
</compile_context>

<pallas_src>
import functools

import jax
import jax.numpy as jnp
from jax.experimental import pallas as pl
from jax.experimental.pallas import tpu as pltpu


# ---------------------------------------------------------------------------
# Fused forward kernel
# ---------------------------------------------------------------------------

def e2e_kernel(sel_ref, a_ref, x0_ref, gw1_ref, gb1_ref, gwm_ref, gbm_ref,
               gw3_ref, gb3_ref, poola_ref, seq_ref, wih_ref, whh_ref, lb_ref,
               dw_ref, db_ref, out_ref, *, num_mid, lstm_layers, T, B, H):
    """Fused GCN -> mean-pool -> LSTM (wavefront) -> dense forward.

    sel_ref  : [B, T] f32 one-hot selector for the last valid timestep per sequence
    a_ref    : [N, N] bf16 normalized adjacency (D^-1/2 (A+I) D^-1/2)
    x0_ref   : [N, Din] bf16 node embeddings
    gw*/gb*  : GCN weights (bf16) / biases (f32)
    poola_ref: [B, N] bf16 = pool @ A_hat (last conv propagation folded into pooling)
    seq_ref  : [T*B, H] bf16 token embeddings, time-major flattened (row = t*B + b)
    wih/whh  : [L, H, 4H] bf16 (pre-transposed, gate order i,f,g,o; i/f/o cols pre-scaled 0.5)
    lb       : [L, 1, 4H] f32 = (b_ih + b_hh) with i/f/o cols pre-scaled 0.5
    dw/db    : [H, out_dim] bf16, [1, out_dim] f32
    """
    f32 = jnp.float32
    bf16 = jnp.bfloat16

    # ---- GCN (eval: dropout = identity). bf16 MXU operands, f32 accumulation. ----
    a = a_ref[...]                                                       # (N,N) bf16
    xw = jnp.dot(x0_ref[...], gw1_ref[...], preferred_element_type=f32)
    x = jnp.dot(a, xw.astype(bf16), preferred_element_type=f32) + gb1_ref[...]
    for m in range(num_mid):                        # static unroll over mid convs
        xr = jnp.maximum(x, 0.0).astype(bf16)       # ReLU before each mid conv (not before last)
        xw = jnp.dot(xr, gwm_ref[m], preferred_element_type=f32)
        x = jnp.dot(a, xw.astype(bf16), preferred_element_type=f32) + gbm_ref[m]
    # Last conv folded with mean-pool: graph_emb = (pool @ A_hat) @ (x @ W3) + b3.
    xw3 = jnp.dot(x.astype(bf16), gw3_ref[...], preferred_element_type=f32)
    graph_emb = jnp.dot(poola_ref[...], xw3.astype(bf16),
                        preferred_element_type=f32) + gb3_ref[...]       # (B,H) f32

    # ---- LSTM: h0 = c0 = graph_emb for every layer (lstm(x, (h, h))) ----
    L = lstm_layers
    wih = [wih_ref[l] for l in range(L)]            # hoist weight loads out of the loops
    whh = [whh_ref[l] for l in range(L)]
    lb = [lb_ref[l] for l in range(L)]

    # Hoisted input-path gate matmul for layer 0 only (all timesteps at once).
    gx0 = jnp.dot(seq_ref[...], wih[0], preferred_element_type=f32) + lb[0]   # (T*B, 4H) f32

    hs = [graph_emb] * L                            # per-layer h, vreg-resident (f32)
    cs = [graph_emb] * L                            # per-layer c, f32
    x_last = jnp.zeros((B, H), f32)
    sel = sel_ref[...]                              # (B, T) f32

    # Wavefront schedule: at step s, layer l processes timestep t = s - l.
    # Within a step, layers are visited in DECREASING order so hs[l-1] still holds
    # the hidden of layer l-1 at timestep t (it gets advanced to t+1 afterwards).
    for s in range(T + L - 1):                      # static unroll (T + L - 1 steps)
        for l in reversed(range(L)):
            t = s - l
            if t < 0 or t >= T:
                continue
            if l == 0:
                gx = gx0[t * B:(t + 1) * B, :]                       # static row slice
            else:
                gx = jnp.dot(hs[l - 1].astype(bf16), wih[l],
                             preferred_element_type=f32) + lb[l]     # vreg-fed input path
            gates = gx + jnp.dot(hs[l].astype(bf16), whh[l],
                                 preferred_element_type=f32)
            # Single full-width tanh (i/f/o columns pre-scaled by 0.5 in the weights):
            #   sigmoid(x) = 0.5 * tanh(x/2) + 0.5
            act = jnp.tanh(gates)
            i_g = 0.5 * act[:, 0 * H:1 * H] + 0.5
            f_g = 0.5 * act[:, 1 * H:2 * H] + 0.5
            g_g = act[:, 2 * H:3 * H]
            o_g = 0.5 * act[:, 3 * H:4 * H] + 0.5
            c_new = f_g * cs[l] + i_g * g_g
            h_new = o_g * jnp.tanh(c_new)
            cs[l] = c_new
            hs[l] = h_new
            if l == L - 1:                          # in-loop "last valid h" selection
                x_last = x_last + sel[:, t:t + 1] * h_new

    # ---- dense head ----
    out_ref[...] = jnp.dot(x_last.astype(bf16), dw_ref[...],
                           preferred_element_type=f32) + db_ref[...]


def e2e_fused(sel, a_hat, x0, gw1, gb1, gwm, gbm, gw3, gb3, pool_a,
              seq_flat, wih, whh, lb, dw, db, *, num_mid, T, B):
    L, H, _ = whh.shape
    out_dim = dw.shape[1]
    kernel = functools.partial(e2e_kernel, num_mid=num_mid, lstm_layers=L,
                               T=T, B=B, H=H)
    vmem = pl.BlockSpec(memory_space=pltpu.MemorySpace.VMEM)
    args = (sel, a_hat, x0, gw1, gb1, gwm, gbm, gw3, gb3, pool_a,
            seq_flat, wih, whh, lb, dw, db)

    # Advisory cost estimate (tiny custom call; helps XLA's scheduler around it).
    N, Din = x0.shape
    Hc = gw1.shape[1]
    flops = int(2 * (N * Din * Hc + N * N * Hc)
                + num_mid * 2 * (N * Hc * Hc + N * N * Hc)
                + 2 * N * Hc * H + 2 * B * N * H
                + L * T * 2 * (2 * B * H * 4 * H)
                + 2 * B * H * out_dim)
    transcendentals = int(L * T * B * 5 * H)        # tanh(gates) + tanh(c) per step
    bytes_accessed = int(sum(int(a.size) * a.dtype.itemsize for a in args)
                         + B * out_dim * 4)

    return pl.pallas_call(
        kernel,
        out_shape=jax.ShapeDtypeStruct((B, out_dim), jnp.float32),
        in_specs=[vmem] * len(args),
        out_specs=vmem,
        cost_estimate=pl.CostEstimate(flops=flops,
                                      transcendentals=transcendentals,
                                      bytes_accessed=bytes_accessed),
    )(*args)


# ---------------------------------------------------------------------------
# Model glue (parameter setup, embedding lookups, adjacency normalization)
# ---------------------------------------------------------------------------

def make_params(key, *, len_types, seq_vocab, emb_dim, gcn_hidden, gcn_out,
                gcn_num_layers, se_input_dim, lstm_layers, out_dim):
    assert se_input_dim == gcn_out, "'sequential' mode requires se_input_dim == gcn_output_dim"
    ks = jax.random.split(key, 32)
    it = iter(ks)
    s = 0.1

    def nrm(shape):
        return (s * jax.random.normal(next(it), shape)).astype(jnp.float32)

    H = gcn_out
    num_mid = gcn_num_layers - 2
    if num_mid > 0:
        gcn_mid_w = jnp.stack([nrm((gcn_hidden, gcn_hidden)) for _ in range(num_mid)])
        gcn_mid_b = jnp.stack([nrm((1, gcn_hidden)) for _ in range(num_mid)])
    else:  # dummy (skipped by static loop)
        gcn_mid_w = jnp.zeros((1, gcn_hidden, gcn_hidden), jnp.float32)
        gcn_mid_b = jnp.zeros((1, 1, gcn_hidden), jnp.float32)

    p = {
        "node_emb_table": nrm((len_types, emb_dim)),
        "gcn_first_w": nrm((emb_dim, gcn_hidden)),
        "gcn_first_b": nrm((1, gcn_hidden)),
        "gcn_mid_w": gcn_mid_w,
        "gcn_mid_b": gcn_mid_b,
        "gcn_num_mid": num_mid,                      # static python int
        "gcn_last_w": nrm((gcn_hidden, gcn_out)),
        "gcn_last_b": nrm((1, gcn_out)),
        "tok_emb_table": nrm((seq_vocab, se_input_dim)),
        # LSTM weights pre-transposed to [in, 4H]; combined bias b_ih + b_hh.
        "lstm_wih": jnp.stack([nrm((se_input_dim if l == 0 else H, 4 * H))
                               for l in range(lstm_layers)]),
        "lstm_whh": jnp.stack([nrm((H, 4 * H)) for _ in range(lstm_layers)]),
        "lstm_b": jnp.stack([nrm((1, 4 * H)) for _ in range(lstm_layers)]),
        "dense_w": nrm((se_input_dim, out_dim)),
        "dense_b": nrm((1, out_dim)),
    }
    return p


def build_a_hat(edge_index, num_nodes):
    src, dst = edge_index
    A = jnp.zeros((num_nodes, num_nodes), jnp.float32)
    A = A.at[dst, src].add(1.0)                       # message j -> i
    A = A + jnp.eye(num_nodes, dtype=jnp.float32)     # add self loops
    deg = A.sum(axis=1)
    dinv = 1.0 / jnp.sqrt(deg)
    return dinv[:, None] * A * dinv[None, :]


def e2e_regression_forward(params, node_type, edge_index, batch, num_graphs,
                           sequence, sequence_len):
    bf16 = jnp.bfloat16

    # ---- graph-side preprocessing (tiny gathers / scatter; stays in XLA) ----
    N = node_type.shape[0]
    a_hat = build_a_hat(edge_index, N)
    x0 = params["node_emb_table"][node_type].astype(jnp.float32)          # [N, emb_dim]

    onehot = (batch[None, :] == jnp.arange(num_graphs)[:, None]).astype(jnp.float32)
    counts = jnp.maximum(onehot.sum(axis=1, keepdims=True), 1.0)          # guard empty graphs
    pool = onehot / counts                                                # [G, N]
    pool_a = pool @ a_hat            # fold last GCN propagation into pooling (rows sum to 1)

    # ---- sequence-side preprocessing: embedding lookup, time-major flat layout ----
    seq_emb = params["tok_emb_table"][sequence].astype(jnp.float32)       # [B, T, H]
    B, T, H = seq_emb.shape
    assert num_graphs == B, "graph batch size must equal sequence batch size"
    seq_flat = jnp.transpose(seq_emb, (1, 0, 2)).reshape(T * B, H)        # row = t*B + b

    # ---- last-timestep one-hot selector (clamped so len==0 behaves like len==1) ----
    last_t = jnp.clip(sequence_len.astype(jnp.int32) - 1, 0, T - 1)
    sel = (jnp.arange(T, dtype=jnp.int32)[None, :] == last_t[:, None]).astype(jnp.float32)

    # ---- fold sigmoid->tanh rewrite: scale i/f/o gate columns by 0.5 at trace time ----
    col = jnp.arange(4 * H)
    gate_scale = jnp.where((col >= 2 * H) & (col < 3 * H), 1.0, 0.5).astype(jnp.float32)
    wih_s = params["lstm_wih"] * gate_scale
    whh_s = params["lstm_whh"] * gate_scale
    lb_s = params["lstm_b"] * gate_scale

    # ---- single fused Pallas kernel (bf16 MXU operands, f32 accumulation/state) ----
    return e2e_fused(
        sel, a_hat.astype(bf16), x0.astype(bf16),
        params["gcn_first_w"].astype(bf16), params["gcn_first_b"],
        params["gcn_mid_w"].astype(bf16), params["gcn_mid_b"],
        params["gcn_last_w"].astype(bf16), params["gcn_last_b"],
        pool_a.astype(bf16), seq_flat.astype(bf16),
        wih_s.astype(bf16), whh_s.astype(bf16), lb_s,
        params["dense_w"].astype(bf16), params["dense_b"],
        num_mid=params["gcn_num_mid"], T=T, B=B)


# ---------------------------------------------------------------------------
# Main
# ---------------------------------------------------------------------------

if __name__ == "__main__":
    key = jax.random.PRNGKey(0)

    # config (small, consistent with module constructor)
    LEN_TYPES = 8
    SEQ_VOCAB = 16
    GCN_HIDDEN = 32
    GCN_OUT = 32
    GCN_NUM_LAYERS = 3
    SE_INPUT_DIM = 32          # must equal GCN_OUT in 'sequential' mode
    LSTM_LAYERS = 2
    OUT_DIM = 2
    EMB_DIM = 32

    # graph batch: 2 ring graphs of 8 nodes each
    NUM_GRAPHS = 2
    NODES_PER_GRAPH = 8
    N = NUM_GRAPHS * NODES_PER_GRAPH
    src_list, dst_list = [], []
    for g in range(NUM_GRAPHS):
        off = g * NODES_PER_GRAPH
        for i in range(NODES_PER_GRAPH):
            a, b = off + i, off + (i + 1) % NODES_PER_GRAPH
            src_list += [a, b]
            dst_list += [b, a]
    edge_index = jnp.array([src_list, dst_list], dtype=jnp.int32)
    batch = jnp.repeat(jnp.arange(NUM_GRAPHS, dtype=jnp.int32), NODES_PER_GRAPH)

    k_nt, k_seq, k_par = jax.random.split(key, 3)
    node_type = jax.random.randint(k_nt, (N,), 0, LEN_TYPES, dtype=jnp.int32)

    # sequence batch
    B, T = 2, 8
    sequence = jax.random.randint(k_seq, (B, T), 0, SEQ_VOCAB, dtype=jnp.int32)
    sequence_len = jnp.array([8, 5], dtype=jnp.int32)

    params = make_params(
        k_par, len_types=LEN_TYPES, seq_vocab=SEQ_VOCAB, emb_dim=EMB_DIM,
        gcn_hidden=GCN_HIDDEN, gcn_out=GCN_OUT, gcn_num_layers=GCN_NUM_LAYERS,
        se_input_dim=SE_INPUT_DIM, lstm_layers=LSTM_LAYERS, out_dim=OUT_DIM)

    out = e2e_regression_forward(params, node_type, edge_index, batch, NUM_GRAPHS,
                                 sequence, sequence_len)
    out = jax.block_until_ready(out)
    assert out.shape == (B, OUT_DIM) and out.dtype == jnp.float32
    assert bool(jnp.all(jnp.isfinite(out)))
    print("KERNEL_OK")
</pallas_src>

<mosaic_0001>
module attributes {stable_mosaic.version = 11 : i64} {
  func.func @e2e_kernel(%arg0: memref<2x8xf32, #tpu.memory_space<vmem>>, %arg1: memref<16x16xbf16, #tpu.memory_space<vmem>>, %arg2: memref<16x32xbf16, #tpu.memory_space<vmem>>, %arg3: memref<32x32xbf16, #tpu.memory_space<vmem>>, %arg4: memref<1x32xf32, #tpu.memory_space<vmem>>, %arg5: memref<1x32x32xbf16, #tpu.memory_space<vmem>>, %arg6: memref<1x1x32xf32, #tpu.memory_space<vmem>>, %arg7: memref<32x32xbf16, #tpu.memory_space<vmem>>, %arg8: memref<1x32xf32, #tpu.memory_space<vmem>>, %arg9: memref<2x16xbf16, #tpu.memory_space<vmem>>, %arg10: memref<16x32xbf16, #tpu.memory_space<vmem>>, %arg11: memref<2x32x128xbf16, #tpu.memory_space<vmem>>, %arg12: memref<2x32x128xbf16, #tpu.memory_space<vmem>>, %arg13: memref<2x1x128xf32, #tpu.memory_space<vmem>>, %arg14: memref<32x2xbf16, #tpu.memory_space<vmem>>, %arg15: memref<1x2xf32, #tpu.memory_space<vmem>>, %arg16: memref<2x2xf32, #tpu.memory_space<vmem>>) attributes {dimension_semantics = [], scalar_prefetch = 0 : i64, scratch_operands = 0 : i64, tpu.core_type = #tpu.core_type<tc>} {
    %c0 = arith.constant 0 : index
    %c0_0 = arith.constant 0 : index
    %0 = vector.load %arg1[%c0, %c0_0] : memref<16x16xbf16, #tpu.memory_space<vmem>>, vector<16x16xbf16>
    %c0_1 = arith.constant 0 : index
    %c0_2 = arith.constant 0 : index
    %1 = vector.load %arg2[%c0_1, %c0_2] : memref<16x32xbf16, #tpu.memory_space<vmem>>, vector<16x32xbf16>
    %c0_3 = arith.constant 0 : index
    %c0_4 = arith.constant 0 : index
    %2 = vector.load %arg3[%c0_3, %c0_4] : memref<32x32xbf16, #tpu.memory_space<vmem>>, vector<32x32xbf16>
    %cst = arith.constant dense<0.000000e+00> : vector<16x32xf32>
    %3 = tpu.matmul %1, %2, %cst {dimension_numbers = #tpu.dot_dimension_numbers<[1], [0], [0], [1], [0, 0, 1, 1], [], []>} : vector<16x32xbf16>, vector<32x32xbf16>, vector<16x32xf32> -> vector<16x32xf32>
    %4 = arith.truncf %3 : vector<16x32xf32> to vector<16x32xbf16>
    %cst_5 = arith.constant dense<0.000000e+00> : vector<16x32xf32>
    %5 = tpu.matmul %0, %4, %cst_5 {dimension_numbers = #tpu.dot_dimension_numbers<[1], [0], [0], [1], [0, 0, 1, 1], [], []>} : vector<16x16xbf16>, vector<16x32xbf16>, vector<16x32xf32> -> vector<16x32xf32>
    %c0_6 = arith.constant 0 : index
    %c0_7 = arith.constant 0 : index
    %6 = vector.load %arg4[%c0_6, %c0_7] : memref<1x32xf32, #tpu.memory_space<vmem>>, vector<1x32xf32>
    %7 = vector.broadcast %6 : vector<1x32xf32> to vector<16x32xf32>
    %8 = arith.addf %5, %7 : vector<16x32xf32>
    %cst_8 = arith.constant 0.000000e+00 : f32
    %9 = vector.broadcast %cst_8 : f32 to vector<16x32xf32>
    %10 = arith.maximumf %8, %9 : vector<16x32xf32>
    %11 = arith.truncf %10 : vector<16x32xf32> to vector<16x32xbf16>
    %c0_9 = arith.constant 0 : index
    %c0_10 = arith.constant 0 : index
    %c0_11 = arith.constant 0 : index
    %12 = vector.load %arg5[%c0_9, %c0_10, %c0_11] : memref<1x32x32xbf16, #tpu.memory_space<vmem>>, vector<1x32x32xbf16>
    %13 = vector.shape_cast %12 : vector<1x32x32xbf16> to vector<32x32xbf16>
    %cst_12 = arith.constant dense<0.000000e+00> : vector<16x32xf32>
    %14 = tpu.matmul %11, %13, %cst_12 {dimension_numbers = #tpu.dot_dimension_numbers<[1], [0], [0], [1], [0, 0, 1, 1], [], []>} : vector<16x32xbf16>, vector<32x32xbf16>, vector<16x32xf32> -> vector<16x32xf32>
    %15 = arith.truncf %14 : vector<16x32xf32> to vector<16x32xbf16>
    %cst_13 = arith.constant dense<0.000000e+00> : vector<16x32xf32>
    %16 = tpu.matmul %0, %15, %cst_13 {dimension_numbers = #tpu.dot_dimension_numbers<[1], [0], [0], [1], [0, 0, 1, 1], [], []>} : vector<16x16xbf16>, vector<16x32xbf16>, vector<16x32xf32> -> vector<16x32xf32>
    %c0_14 = arith.constant 0 : index
    %c0_15 = arith.constant 0 : index
    %c0_16 = arith.constant 0 : index
    %17 = vector.load %arg6[%c0_14, %c0_15, %c0_16] : memref<1x1x32xf32, #tpu.memory_space<vmem>>, vector<1x1x32xf32>
    %18 = vector.shape_cast %17 : vector<1x1x32xf32> to vector<1x32xf32>
    %19 = vector.broadcast %18 : vector<1x32xf32> to vector<16x32xf32>
    %20 = arith.addf %16, %19 : vector<16x32xf32>
    %21 = arith.truncf %20 : vector<16x32xf32> to vector<16x32xbf16>
    %c0_17 = arith.constant 0 : index
    %c0_18 = arith.constant 0 : index
    %22 = vector.load %arg7[%c0_17, %c0_18] : memref<32x32xbf16, #tpu.memory_space<vmem>>, vector<32x32xbf16>
    %cst_19 = arith.constant dense<0.000000e+00> : vector<16x32xf32>
    %23 = tpu.matmul %21, %22, %cst_19 {dimension_numbers = #tpu.dot_dimension_numbers<[1], [0], [0], [1], [0, 0, 1, 1], [], []>} : vector<16x32xbf16>, vector<32x32xbf16>, vector<16x32xf32> -> vector<16x32xf32>
    %c0_20 = arith.constant 0 : index
    %c0_21 = arith.constant 0 : index
    %24 = vector.load %arg9[%c0_20, %c0_21] : memref<2x16xbf16, #tpu.memory_space<vmem>>, vector<2x16xbf16>
    %25 = arith.truncf %23 : vector<16x32xf32> to vector<16x32xbf16>
    %cst_22 = arith.constant dense<0.000000e+00> : vector<2x32xf32>
    %26 = tpu.matmul %24, %25, %cst_22 {dimension_numbers = #tpu.dot_dimension_numbers<[1], [0], [0], [1], [0, 0, 1, 1], [], []>} : vector<2x16xbf16>, vector<16x32xbf16>, vector<2x32xf32> -> vector<2x32xf32>
    %c0_23 = arith.constant 0 : index
    %c0_24 = arith.constant 0 : index
    %27 = vector.load %arg8[%c0_23, %c0_24] : memref<1x32xf32, #tpu.memory_space<vmem>>, vector<1x32xf32>
    %28 = vector.broadcast %27 : vector<1x32xf32> to vector<2x32xf32>
    %29 = arith.addf %26, %28 : vector<2x32xf32>
    %c0_25 = arith.constant 0 : index
    %c0_26 = arith.constant 0 : index
    %c0_27 = arith.constant 0 : index
    %30 = vector.load %arg11[%c0_25, %c0_26, %c0_27] : memref<2x32x128xbf16, #tpu.memory_space<vmem>>, vector<1x32x128xbf16>
    %31 = vector.shape_cast %30 : vector<1x32x128xbf16> to vector<32x128xbf16>
    %c1 = arith.constant 1 : index
    %c0_28 = arith.constant 0 : index
    %c0_29 = arith.constant 0 : index
    %32 = vector.load %arg11[%c1, %c0_28, %c0_29] : memref<2x32x128xbf16, #tpu.memory_space<vmem>>, vector<1x32x128xbf16>
    %33 = vector.shape_cast %32 : vector<1x32x128xbf16> to vector<32x128xbf16>
    %c0_30 = arith.constant 0 : index
    %c0_31 = arith.constant 0 : index
    %c0_32 = arith.constant 0 : index
    %34 = vector.load %arg12[%c0_30, %c0_31, %c0_32] : memref<2x32x128xbf16, #tpu.memory_space<vmem>>, vector<1x32x128xbf16>
    %35 = vector.shape_cast %34 : vector<1x32x128xbf16> to vector<32x128xbf16>
    %c1_33 = arith.constant 1 : index
    %c0_34 = arith.constant 0 : index
    %c0_35 = arith.constant 0 : index
    %36 = vector.load %arg12[%c1_33, %c0_34, %c0_35] : memref<2x32x128xbf16, #tpu.memory_space<vmem>>, vector<1x32x128xbf16>
    %37 = vector.shape_cast %36 : vector<1x32x128xbf16> to vector<32x128xbf16>
    %c0_36 = arith.constant 0 : index
    %c0_37 = arith.constant 0 : index
    %c0_38 = arith.constant 0 : index
    %38 = vector.load %arg13[%c0_36, %c0_37, %c0_38] : memref<2x1x128xf32, #tpu.memory_space<vmem>>, vector<1x1x128xf32>
    %39 = vector.shape_cast %38 : vector<1x1x128xf32> to vector<1x128xf32>
    %c1_39 = arith.constant 1 : index
    %c0_40 = arith.constant 0 : index
    %c0_41 = arith.constant 0 : index
    %40 = vector.load %arg13[%c1_39, %c0_40, %c0_41] : memref<2x1x128xf32, #tpu.memory_space<vmem>>, vector<1x1x128xf32>
    %41 = vector.shape_cast %40 : vector<1x1x128xf32> to vector<1x128xf32>
    %c0_42 = arith.constant 0 : index
    %c0_43 = arith.constant 0 : index
    %42 = vector.load %arg10[%c0_42, %c0_43] : memref<16x32xbf16, #tpu.memory_space<vmem>>, vector<16x32xbf16>
    %cst_44 = arith.constant dense<0.000000e+00> : vector<16x128xf32>
    %43 = tpu.matmul %42, %31, %cst_44 {dimension_numbers = #tpu.dot_dimension_numbers<[1], [0], [0], [1], [0, 0, 1, 1], [], []>} : vector<16x32xbf16>, vector<32x128xbf16>, vector<16x128xf32> -> vector<16x128xf32>
    %44 = vector.broadcast %39 : vector<1x128xf32> to vector<16x128xf32>
    %45 = arith.addf %43, %44 : vector<16x128xf32>
    %cst_45 = arith.constant 0.000000e+00 : f32
    %46 = vector.broadcast %cst_45 : f32 to vector<2x32xf32>
    %c0_46 = arith.constant 0 : index
    %c0_47 = arith.constant 0 : index
    %47 = vector.load %arg0[%c0_46, %c0_47] : memref<2x8xf32, #tpu.memory_space<vmem>>, vector<2x8xf32>
    %48 = vector.extract_strided_slice %45 {offsets = [0, 0], sizes = [2, 128], strides = [1, 1]} : vector<16x128xf32> to vector<2x128xf32>
    %49 = arith.truncf %29 : vector<2x32xf32> to vector<2x32xbf16>
    %cst_48 = arith.constant dense<0.000000e+00> : vector<2x128xf32>
    %50 = tpu.matmul %49, %35, %cst_48 {dimension_numbers = #tpu.dot_dimension_numbers<[1], [0], [0], [1], [0, 0, 1, 1], [], []>} : vector<2x32xbf16>, vector<32x128xbf16>, vector<2x128xf32> -> vector<2x128xf32>
    %51 = arith.addf %48, %50 : vector<2x128xf32>
    %52 = math.tanh %51 : vector<2x128xf32>
    %53 = vector.extract_strided_slice %52 {offsets = [0, 0], sizes = [2, 32], strides = [1, 1]} : vector<2x128xf32> to vector<2x32xf32>
    %cst_49 = arith.constant 5.000000e-01 : f32
    %54 = vector.broadcast %cst_49 : f32 to vector<2x32xf32>
    %55 = arith.mulf %54, %53 : vector<2x32xf32>
    %cst_50 = arith.constant 5.000000e-01 : f32
    %56 = vector.broadcast %cst_50 : f32 to vector<2x32xf32>
    %57 = arith.addf %55, %56 : vector<2x32xf32>
    %58 = vector.extract_strided_slice %52 {offsets = [0, 32], sizes = [2, 32], strides = [1, 1]} : vector<2x128xf32> to vector<2x32xf32>
    %cst_51 = arith.constant 5.000000e-01 : f32
    %59 = vector.broadcast %cst_51 : f32 to vector<2x32xf32>
    %60 = arith.mulf %59, %58 : vector<2x32xf32>
    %cst_52 = arith.constant 5.000000e-01 : f32
    %61 = vector.broadcast %cst_52 : f32 to vector<2x32xf32>
    %62 = arith.addf %60, %61 : vector<2x32xf32>
    %63 = vector.extract_strided_slice %52 {offsets = [0, 64], sizes = [2, 32], strides = [1, 1]} : vector<2x128xf32> to vector<2x32xf32>
    %64 = vector.extract_strided_slice %52 {offsets = [0, 96], sizes = [2, 32], strides = [1, 1]} : vector<2x128xf32> to vector<2x32xf32>
    %cst_53 = arith.constant 5.000000e-01 : f32
    %65 = vector.broadcast %cst_53 : f32 to vector<2x32xf32>
    %66 = arith.mulf %65, %64 : vector<2x32xf32>
    %cst_54 = arith.constant 5.000000e-01 : f32
    %67 = vector.broadcast %cst_54 : f32 to vector<2x32xf32>
    %68 = arith.addf %66, %67 : vector<2x32xf32>
    %69 = arith.mulf %62, %29 : vector<2x32xf32>
    %70 = arith.mulf %57, %63 : vector<2x32xf32>
    %71 = arith.addf %69, %70 : vector<2x32xf32>
    %72 = math.tanh %71 : vector<2x32xf32>
    %73 = arith.mulf %68, %72 : vector<2x32xf32>
    %74 = arith.truncf %73 : vector<2x32xf32> to vector<2x32xbf16>
    %cst_55 = arith.constant dense<0.000000e+00> : vector<2x128xf32>
    %75 = tpu.matmul %74, %33, %cst_55 {dimension_numbers = #tpu.dot_dimension_numbers<[1], [0], [0], [1], [0, 0, 1, 1], [], []>} : vector<2x32xbf16>, vector<32x128xbf16>, vector<2x128xf32> -> vector<2x128xf32>
    %76 = vector.broadcast %41 : vector<1x128xf32> to vector<2x128xf32>
    %77 = arith.addf %75, %76 : vector<2x128xf32>
    %78 = arith.truncf %29 : vector<2x32xf32> to vector<2x32xbf16>
    %cst_56 = arith.constant dense<0.000000e+00> : vector<2x128xf32>
    %79 = tpu.matmul %78, %37, %cst_56 {dimension_numbers = #tpu.dot_dimension_numbers<[1], [0], [0], [1], [0, 0, 1, 1], [], []>} : vector<2x32xbf16>, vector<32x128xbf16>, vector<2x128xf32> -> vector<2x128xf32>
    %80 = arith.addf %77, %79 : vector<2x128xf32>
    %81 = math.tanh %80 : vector<2x128xf32>
    %82 = vector.extract_strided_slice %81 {offsets = [0, 0], sizes = [2, 32], strides = [1, 1]} : vector<2x128xf32> to vector<2x32xf32>
    %cst_57 = arith.constant 5.000000e-01 : f32
    %83 = vector.broadcast %cst_57 : f32 to vector<2x32xf32>
    %84 = arith.mulf %83, %82 : vector<2x32xf32>
    %cst_58 = arith.constant 5.000000e-01 : f32
    %85 = vector.broadcast %cst_58 : f32 to vector<2x32xf32>
    %86 = arith.addf %84, %85 : vector<2x32xf32>
    %87 = vector.extract_strided_slice %81 {offsets = [0, 32], sizes = [2, 32], strides = [1, 1]} : vector<2x128xf32> to vector<2x32xf32>
    %cst_59 = arith.constant 5.000000e-01 : f32
    %88 = vector.broadcast %cst_59 : f32 to vector<2x32xf32>
    %89 = arith.mulf %88, %87 : vector<2x32xf32>
    %cst_60 = arith.constant 5.000000e-01 : f32
    %90 = vector.broadcast %cst_60 : f32 to vector<2x32xf32>
    %91 = arith.addf %89, %90 : vector<2x32xf32>
    %92 = vector.extract_strided_slice %81 {offsets = [0, 64], sizes = [2, 32], strides = [1, 1]} : vector<2x128xf32> to vector<2x32xf32>
    %93 = vector.extract_strided_slice %81 {offsets = [0, 96], sizes = [2, 32], strides = [1, 1]} : vector<2x128xf32> to vector<2x32xf32>
    %cst_61 = arith.constant 5.000000e-01 : f32
    %94 = vector.broadcast %cst_61 : f32 to vector<2x32xf32>
    %95 = arith.mulf %94, %93 : vector<2x32xf32>
    %cst_62 = arith.constant 5.000000e-01 : f32
    %96 = vector.broadcast %cst_62 : f32 to vector<2x32xf32>
    %97 = arith.addf %95, %96 : vector<2x32xf32>
    %98 = arith.mulf %91, %29 : vector<2x32xf32>
    %99 = arith.mulf %86, %92 : vector<2x32xf32>
    %100 = arith.addf %98, %99 : vector<2x32xf32>
    %101 = math.tanh %100 : vector<2x32xf32>
    %102 = arith.mulf %97, %101 : vector<2x32xf32>
    %103 = vector.extract_strided_slice %47 {offsets = [0, 0], sizes = [2, 1], strides = [1, 1]} : vector<2x8xf32> to vector<2x1xf32>
    %104 = vector.broadcast %103 : vector<2x1xf32> to vector<2x32xf32>
    %105 = arith.mulf %104, %102 : vector<2x32xf32>
    %106 = arith.addf %46, %105 : vector<2x32xf32>
    %107 = vector.extract_strided_slice %45 {offsets = [2, 0], sizes = [2, 128], strides = [1, 1]} : vector<16x128xf32> to vector<2x128xf32>
    %108 = arith.truncf %73 : vector<2x32xf32> to vector<2x32xbf16>
    %cst_63 = arith.constant dense<0.000000e+00> : vector<2x128xf32>
    %109 = tpu.matmul %108, %35, %cst_63 {dimension_numbers = #tpu.dot_dimension_numbers<[1], [0], [0], [1], [0, 0, 1, 1], [], []>} : vector<2x32xbf16>, vector<32x128xbf16>, vector<2x128xf32> -> vector<2x128xf32>
    %110 = arith.addf %107, %109 : vector<2x128xf32>
    %111 = math.tanh %110 : vector<2x128xf32>
    %112 = vector.extract_strided_slice %111 {offsets = [0, 0], sizes = [2, 32], strides = [1, 1]} : vector<2x128xf32> to vector<2x32xf32>
    %cst_64 = arith.constant 5.000000e-01 : f32
    %113 = vector.broadcast %cst_64 : f32 to vector<2x32xf32>
    %114 = arith.mulf %113, %112 : vector<2x32xf32>
    %cst_65 = arith.constant 5.000000e-01 : f32
    %115 = vector.broadcast %cst_65 : f32 to vector<2x32xf32>
    %116 = arith.addf %114, %115 : vector<2x32xf32>
    %117 = vector.extract_strided_slice %111 {offsets = [0, 32], sizes = [2, 32], strides = [1, 1]} : vector<2x128xf32> to vector<2x32xf32>
    %cst_66 = arith.constant 5.000000e-01 : f32
    %118 = vector.broadcast %cst_66 : f32 to vector<2x32xf32>
    %119 = arith.mulf %118, %117 : vector<2x32xf32>
    %cst_67 = arith.constant 5.000000e-01 : f32
    %120 = vector.broadcast %cst_67 : f32 to vector<2x32xf32>
    %121 = arith.addf %119, %120 : vector<2x32xf32>
    %122 = vector.extract_strided_slice %111 {offsets = [0, 64], sizes = [2, 32], strides = [1, 1]} : vector<2x128xf32> to vector<2x32xf32>
    %123 = vector.extract_strided_slice %111 {offsets = [0, 96], sizes = [2, 32], strides = [1, 1]} : vector<2x128xf32> to vector<2x32xf32>
    %cst_68 = arith.constant 5.000000e-01 : f32
    %124 = vector.broadcast %cst_68 : f32 to vector<2x32xf32>
    %125 = arith.mulf %124, %123 : vector<2x32xf32>
    %cst_69 = arith.constant 5.000000e-01 : f32
    %126 = vector.broadcast %cst_69 : f32 to vector<2x32xf32>
    %127 = arith.addf %125, %126 : vector<2x32xf32>
    %128 = arith.mulf %121, %71 : vector<2x32xf32>
    %129 = arith.mulf %116, %122 : vector<2x32xf32>
    %130 = arith.addf %128, %129 : vector<2x32xf32>
    %131 = math.tanh %130 : vector<2x32xf32>
    %132 = arith.mulf %127, %131 : vector<2x32xf32>
    %133 = arith.truncf %132 : vector<2x32xf32> to vector<2x32xbf16>
    %cst_70 = arith.constant dense<0.000000e+00> : vector<2x128xf32>
    %134 = tpu.matmul %133, %33, %cst_70 {dimension_numbers = #tpu.dot_dimension_numbers<[1], [0], [0], [1], [0, 0, 1, 1], [], []>} : vector<2x32xbf16>, vector<32x128xbf16>, vector<2x128xf32> -> vector<2x128xf32>
    %135 = vector.broadcast %41 : vector<1x128xf32> to vector<2x128xf32>
    %136 = arith.addf %134, %135 : vector<2x128xf32>
    %137 = arith.truncf %102 : vector<2x32xf32> to vector<2x32xbf16>
    %cst_71 = arith.constant dense<0.000000e+00> : vector<2x128xf32>
    %138 = tpu.matmul %137, %37, %cst_71 {dimension_numbers = #tpu.dot_dimension_numbers<[1], [0], [0], [1], [0, 0, 1, 1], [], []>} : vector<2x32xbf16>, vector<32x128xbf16>, vector<2x128xf32> -> vector<2x128xf32>
    %139 = arith.addf %136, %138 : vector<2x128xf32>
    %140 = math.tanh %139 : vector<2x128xf32>
    %141 = vector.extract_strided_slice %140 {offsets = [0, 0], sizes = [2, 32], strides = [1, 1]} : vector<2x128xf32> to vector<2x32xf32>
    %cst_72 = arith.constant 5.000000e-01 : f32
    %142 = vector.broadcast %cst_72 : f32 to vector<2x32xf32>
    %143 = arith.mulf %142, %141 : vector<2x32xf32>
    %cst_73 = arith.constant 5.000000e-01 : f32
    %144 = vector.broadcast %cst_73 : f32 to vector<2x32xf32>
    %145 = arith.addf %143, %144 : vector<2x32xf32>
    %146 = vector.extract_strided_slice %140 {offsets = [0, 32], sizes = [2, 32], strides = [1, 1]} : vector<2x128xf32> to vector<2x32xf32>
    %cst_74 = arith.constant 5.000000e-01 : f32
    %147 = vector.broadcast %cst_74 : f32 to vector<2x32xf32>
    %148 = arith.mulf %147, %146 : vector<2x32xf32>
    %cst_75 = arith.constant 5.000000e-01 : f32
    %149 = vector.broadcast %cst_75 : f32 to vector<2x32xf32>
    %150 = arith.addf %148, %149 : vector<2x32xf32>
    %151 = vector.extract_strided_slice %140 {offsets = [0, 64], sizes = [2, 32], strides = [1, 1]} : vector<2x128xf32> to vector<2x32xf32>
    %152 = vector.extract_strided_slice %140 {offsets = [0, 96], sizes = [2, 32], strides = [1, 1]} : vector<2x128xf32> to vector<2x32xf32>
    %cst_76 = arith.constant 5.000000e-01 : f32
    %153 = vector.broadcast %cst_76 : f32 to vector<2x32xf32>
    %154 = arith.mulf %153, %152 : vector<2x32xf32>
    %cst_77 = arith.constant 5.000000e-01 : f32
    %155 = vector.broadcast %cst_77 : f32 to vector<2x32xf32>
    %156 = arith.addf %154, %155 : vector<2x32xf32>
    %157 = arith.mulf %150, %100 : vector<2x32xf32>
    %158 = arith.mulf %145, %151 : vector<2x32xf32>
    %159 = arith.addf %157, %158 : vector<2x32xf32>
    %160 = math.tanh %159 : vector<2x32xf32>
    %161 = arith.mulf %156, %160 : vector<2x32xf32>
    %162 = vector.extract_strided_slice %47 {offsets = [0, 1], sizes = [2, 1], strides = [1, 1]} : vector<2x8xf32> to vector<2x1xf32>
    %163 = vector.broadcast %162 : vector<2x1xf32> to vector<2x32xf32>
    %164 = arith.mulf %163, %161 : vector<2x32xf32>
    %165 = arith.addf %106, %164 : vector<2x32xf32>
    %166 = vector.extract_strided_slice %45 {offsets = [4, 0], sizes = [2, 128], strides = [1, 1]} : vector<16x128xf32> to vector<2x128xf32>
    %167 = arith.truncf %132 : vector<2x32xf32> to vector<2x32xbf16>
    %cst_78 = arith.constant dense<0.000000e+00> : vector<2x128xf32>
    %168 = tpu.matmul %167, %35, %cst_78 {dimension_numbers = #tpu.dot_dimension_numbers<[1], [0], [0], [1], [0, 0, 1, 1], [], []>} : vector<2x32xbf16>, vector<32x128xbf16>, vector<2x128xf32> -> vector<2x128xf32>
    %169 = arith.addf %166, %168 : vector<2x128xf32>
    %170 = math.tanh %169 : vector<2x128xf32>
    %171 = vector.extract_strided_slice %170 {offsets = [0, 0], sizes = [2, 32], strides = [1, 1]} : vector<2x128xf32> to vector<2x32xf32>
    %cst_79 = arith.constant 5.000000e-01 : f32
    %172 = vector.broadcast %cst_79 : f32 to vector<2x32xf32>
    %173 = arith.mulf %172, %171 : vector<2x32xf32>
    %cst_80 = arith.constant 5.000000e-01 : f32
    %174 = vector.broadcast %cst_80 : f32 to vector<2x32xf32>
    %175 = arith.addf %173, %174 : vector<2x32xf32>
    %176 = vector.extract_strided_slice %170 {offsets = [0, 32], sizes = [2, 32], strides = [1, 1]} : vector<2x128xf32> to vector<2x32xf32>
    %cst_81 = arith.constant 5.000000e-01 : f32
    %177 = vector.broadcast %cst_81 : f32 to vector<2x32xf32>
    %178 = arith.mulf %177, %176 : vector<2x32xf32>
    %cst_82 = arith.constant 5.000000e-01 : f32
    %179 = vector.broadcast %cst_82 : f32 to vector<2x32xf32>
    %180 = arith.addf %178, %179 : vector<2x32xf32>
    %181 = vector.extract_strided_slice %170 {offsets = [0, 64], sizes = [2, 32], strides = [1, 1]} : vector<2x128xf32> to vector<2x32xf32>
    %182 = vector.extract_strided_slice %170 {offsets = [0, 96], sizes = [2, 32], strides = [1, 1]} : vector<2x128xf32> to vector<2x32xf32>
    %cst_83 = arith.constant 5.000000e-01 : f32
    %183 = vector.broadcast %cst_83 : f32 to vector<2x32xf32>
    %184 = arith.mulf %183, %182 : vector<2x32xf32>
    %cst_84 = arith.constant 5.000000e-01 : f32
    %185 = vector.broadcast %cst_84 : f32 to vector<2x32xf32>
    %186 = arith.addf %184, %185 : vector<2x32xf32>
    %187 = arith.mulf %180, %130 : vector<2x32xf32>
    %188 = arith.mulf %175, %181 : vector<2x32xf32>
    %189 = arith.addf %187, %188 : vector<2x32xf32>
    %190 = math.tanh %189 : vector<2x32xf32>
    %191 = arith.mulf %186, %190 : vector<2x32xf32>
    %192 = arith.truncf %191 : vector<2x32xf32> to vector<2x32xbf16>
    %cst_85 = arith.constant dense<0.000000e+00> : vector<2x128xf32>
    %193 = tpu.matmul %192, %33, %cst_85 {dimension_numbers = #tpu.dot_dimension_numbers<[1], [0], [0], [1], [0, 0, 1, 1], [], []>} : vector<2x32xbf16>, vector<32x128xbf16>, vector<2x128xf32> -> vector<2x128xf32>
    %194 = vector.broadcast %41 : vector<1x128xf32> to vector<2x128xf32>
    %195 = arith.addf %193, %194 : vector<2x128xf32>
    %196 = arith.truncf %161 : vector<2x32xf32> to vector<2x32xbf16>
    %cst_86 = arith.constant dense<0.000000e+00> : vector<2x128xf32>
    %197 = tpu.matmul %196, %37, %cst_86 {dimension_numbers = #tpu.dot_dimension_numbers<[1], [0], [0], [1], [0, 0, 1, 1], [], []>} : vector<2x32xbf16>, vector<32x128xbf16>, vector<2x128xf32> -> vector<2x128xf32>
    %198 = arith.addf %195, %197 : vector<2x128xf32>
    %199 = math.tanh %198 : vector<2x128xf32>
    %200 = vector.extract_strided_slice %199 {offsets = [0, 0], sizes = [2, 32], strides = [1, 1]} : vector<2x128xf32> to vector<2x32xf32>
    %cst_87 = arith.constant 5.000000e-01 : f32
    %201 = vector.broadcast %cst_87 : f32 to vector<2x32xf32>
    %202 = arith.mulf %201, %200 : vector<2x32xf32>
    %cst_88 = arith.constant 5.000000e-01 : f32
    %203 = vector.broadcast %cst_88 : f32 to vector<2x32xf32>
    %204 = arith.addf %202, %203 : vector<2x32xf32>
    %205 = vector.extract_strided_slice %199 {offsets = [0, 32], sizes = [2, 32], strides = [1, 1]} : vector<2x128xf32> to vector<2x32xf32>
    %cst_89 = arith.constant 5.000000e-01 : f32
    %206 = vector.broadcast %cst_89 : f32 to vector<2x32xf32>
    %207 = arith.mulf %206, %205 : vector<2x32xf32>
    %cst_90 = arith.constant 5.000000e-01 : f32
    %208 = vector.broadcast %cst_90 : f32 to vector<2x32xf32>
    %209 = arith.addf %207, %208 : vector<2x32xf32>
    %210 = vector.extract_strided_slice %199 {offsets = [0, 64], sizes = [2, 32], strides = [1, 1]} : vector<2x128xf32> to vector<2x32xf32>
    %211 = vector.extract_strided_slice %199 {offsets = [0, 96], sizes = [2, 32], strides = [1, 1]} : vector<2x128xf32> to vector<2x32xf32>
    %cst_91 = arith.constant 5.000000e-01 : f32
    %212 = vector.broadcast %cst_91 : f32 to vector<2x32xf32>
    %213 = arith.mulf %212, %211 : vector<2x32xf32>
    %cst_92 = arith.constant 5.000000e-01 : f32
    %214 = vector.broadcast %cst_92 : f32 to vector<2x32xf32>
    %215 = arith.addf %213, %214 : vector<2x32xf32>
    %216 = arith.mulf %209, %159 : vector<2x32xf32>
    %217 = arith.mulf %204, %210 : vector<2x32xf32>
    %218 = arith.addf %216, %217 : vector<2x32xf32>
    %219 = math.tanh %218 : vector<2x32xf32>
    %220 = arith.mulf %215, %219 : vector<2x32xf32>
    %221 = vector.extract_strided_slice %47 {offsets = [0, 2], sizes = [2, 1], strides = [1, 1]} : vector<2x8xf32> to vector<2x1xf32>
    %222 = vector.broadcast %221 : vector<2x1xf32> to vector<2x32xf32>
    %223 = arith.mulf %222, %220 : vector<2x32xf32>
    %224 = arith.addf %165, %223 : vector<2x32xf32>
    %225 = vector.extract_strided_slice %45 {offsets = [6, 0], sizes = [2, 128], strides = [1, 1]} : vector<16x128xf32> to vector<2x128xf32>
    %226 = arith.truncf %191 : vector<2x32xf32> to vector<2x32xbf16>
    %cst_93 = arith.constant dense<0.000000e+00> : vector<2x128xf32>
    %227 = tpu.matmul %226, %35, %cst_93 {dimension_numbers = #tpu.dot_dimension_numbers<[1], [0], [0], [1], [0, 0, 1, 1], [], []>} : vector<2x32xbf16>, vector<32x128xbf16>, vector<2x128xf32> -> vector<2x128xf32>
    %228 = arith.addf %225, %227 : vector<2x128xf32>
    %229 = math.tanh %228 : vector<2x128xf32>
    %230 = vector.extract_strided_slice %229 {offsets = [0, 0], sizes = [2, 32], strides = [1, 1]} : vector<2x128xf32> to vector<2x32xf32>
    %cst_94 = arith.constant 5.000000e-01 : f32
    %231 = vector.broadcast %cst_94 : f32 to vector<2x32xf32>
    %232 = arith.mulf %231, %230 : vector<2x32xf32>
    %cst_95 = arith.constant 5.000000e-01 : f32
    %233 = vector.broadcast %cst_95 : f32 to vector<2x32xf32>
    %234 = arith.addf %232, %233 : vector<2x32xf32>
    %235 = vector.extract_strided_slice %229 {offsets = [0, 32], sizes = [2, 32], strides = [1, 1]} : vector<2x128xf32> to vector<2x32xf32>
    %cst_96 = arith.constant 5.000000e-01 : f32
    %236 = vector.broadcast %cst_96 : f32 to vector<2x32xf32>
    %237 = arith.mulf %236, %235 : vector<2x32xf32>
    %cst_97 = arith.constant 5.000000e-01 : f32
    %238 = vector.broadcast %cst_97 : f32 to vector<2x32xf32>
    %239 = arith.addf %237, %238 : vector<2x32xf32>
    %240 = vector.extract_strided_slice %229 {offsets = [0, 64], sizes = [2, 32], strides = [1, 1]} : vector<2x128xf32> to vector<2x32xf32>
    %241 = vector.extract_strided_slice %229 {offsets = [0, 96], sizes = [2, 32], strides = [1, 1]} : vector<2x128xf32> to vector<2x32xf32>
    %cst_98 = arith.constant 5.000000e-01 : f32
    %242 = vector.broadcast %cst_98 : f32 to vector<2x32xf32>
    %243 = arith.mulf %242, %241 : vector<2x32xf32>
    %cst_99 = arith.constant 5.000000e-01 : f32
    %244 = vector.broadcast %cst_99 : f32 to vector<2x32xf32>
    %245 = arith.addf %243, %244 : vector<2x32xf32>
    %246 = arith.mulf %239, %189 : vector<2x32xf32>
    %247 = arith.mulf %234, %240 : vector<2x32xf32>
    %248 = arith.addf %246, %247 : vector<2x32xf32>
    %249 = math.tanh %248 : vector<2x32xf32>
    %250 = arith.mulf %245, %249 : vector<2x32xf32>
    %251 = arith.truncf %250 : vector<2x32xf32> to vector<2x32xbf16>
    %cst_100 = arith.constant dense<0.000000e+00> : vector<2x128xf32>
    %252 = tpu.matmul %251, %33, %cst_100 {dimension_numbers = #tpu.dot_dimension_numbers<[1], [0], [0], [1], [0, 0, 1, 1], [], []>} : vector<2x32xbf16>, vector<32x128xbf16>, vector<2x128xf32> -> vector<2x128xf32>
    %253 = vector.broadcast %41 : vector<1x128xf32> to vector<2x128xf32>
    %254 = arith.addf %252, %253 : vector<2x128xf32>
    %255 = arith.truncf %220 : vector<2x32xf32> to vector<2x32xbf16>
    %cst_101 = arith.constant dense<0.000000e+00> : vector<2x128xf32>
    %256 = tpu.matmul %255, %37, %cst_101 {dimension_numbers = #tpu.dot_dimension_numbers<[1], [0], [0], [1], [0, 0, 1, 1], [], []>} : vector<2x32xbf16>, vector<32x128xbf16>, vector<2x128xf32> -> vector<2x128xf32>
    %257 = arith.addf %254, %256 : vector<2x128xf32>
    %258 = math.tanh %257 : vector<2x128xf32>
    %259 = vector.extract_strided_slice %258 {offsets = [0, 0], sizes = [2, 32], strides = [1, 1]} : vector<2x128xf32> to vector<2x32xf32>
    %cst_102 = arith.constant 5.000000e-01 : f32
    %260 = vector.broadcast %cst_102 : f32 to vector<2x32xf32>
    %261 = arith.mulf %260, %259 : vector<2x32xf32>
    %cst_103 = arith.constant 5.000000e-01 : f32
    %262 = vector.broadcast %cst_103 : f32 to vector<2x32xf32>
    %263 = arith.addf %261, %262 : vector<2x32xf32>
    %264 = vector.extract_strided_slice %258 {offsets = [0, 32], sizes = [2, 32], strides = [1, 1]} : vector<2x128xf32> to vector<2x32xf32>
    %cst_104 = arith.constant 5.000000e-01 : f32
    %265 = vector.broadcast %cst_104 : f32 to vector<2x32xf32>
    %266 = arith.mulf %265, %264 : vector<2x32xf32>
    %cst_105 = arith.constant 5.000000e-01 : f32
    %267 = vector.broadcast %cst_105 : f32 to vector<2x32xf32>
    %268 = arith.addf %266, %267 : vector<2x32xf32>
    %269 = vector.extract_strided_slice %258 {offsets = [0, 64], sizes = [2, 32], strides = [1, 1]} : vector<2x128xf32> to vector<2x32xf32>
    %270 = vector.extract_strided_slice %258 {offsets = [0, 96], sizes = [2, 32], strides = [1, 1]} : vector<2x128xf32> to vector<2x32xf32>
    %cst_106 = arith.constant 5.000000e-01 : f32
    %271 = vector.broadcast %cst_106 : f32 to vector<2x32xf32>
    %272 = arith.mulf %271, %270 : vector<2x32xf32>
    %cst_107 = arith.constant 5.000000e-01 : f32
    %273 = vector.broadcast %cst_107 : f32 to vector<2x32xf32>
    %274 = arith.addf %272, %273 : vector<2x32xf32>
    %275 = arith.mulf %268, %218 : vector<2x32xf32>
    %276 = arith.mulf %263, %269 : vector<2x32xf32>
    %277 = arith.addf %275, %276 : vector<2x32xf32>
    %278 = math.tanh %277 : vector<2x32xf32>
    %279 = arith.mulf %274, %278 : vector<2x32xf32>
    %280 = vector.extract_strided_slice %47 {offsets = [0, 3], sizes = [2, 1], strides = [1, 1]} : vector<2x8xf32> to vector<2x1xf32>
    %281 = vector.broadcast %280 : vector<2x1xf32> to vector<2x32xf32>
    %282 = arith.mulf %281, %279 : vector<2x32xf32>
    %283 = arith.addf %224, %282 : vector<2x32xf32>
    %284 = vector.extract_strided_slice %45 {offsets = [8, 0], sizes = [2, 128], strides = [1, 1]} : vector<16x128xf32> to vector<2x128xf32>
    %285 = arith.truncf %250 : vector<2x32xf32> to vector<2x32xbf16>
    %cst_108 = arith.constant dense<0.000000e+00> : vector<2x128xf32>
    %286 = tpu.matmul %285, %35, %cst_108 {dimension_numbers = #tpu.dot_dimension_numbers<[1], [0], [0], [1], [0, 0, 1, 1], [], []>} : vector<2x32xbf16>, vector<32x128xbf16>, vector<2x128xf32> -> vector<2x128xf32>
    %287 = arith.addf %284, %286 : vector<2x128xf32>
    %288 = math.tanh %287 : vector<2x128xf32>
    %289 = vector.extract_strided_slice %288 {offsets = [0, 0], sizes = [2, 32], strides = [1, 1]} : vector<2x128xf32> to vector<2x32xf32>
    %cst_109 = arith.constant 5.000000e-01 : f32
    %290 = vector.broadcast %cst_109 : f32 to vector<2x32xf32>
    %291 = arith.mulf %290, %289 : vector<2x32xf32>
    %cst_110 = arith.constant 5.000000e-01 : f32
    %292 = vector.broadcast %cst_110 : f32 to vector<2x32xf32>
    %293 = arith.addf %291, %292 : vector<2x32xf32>
    %294 = vector.extract_strided_slice %288 {offsets = [0, 32], sizes = [2, 32], strides = [1, 1]} : vector<2x128xf32> to vector<2x32xf32>
    %cst_111 = arith.constant 5.000000e-01 : f32
    %295 = vector.broadcast %cst_111 : f32 to vector<2x32xf32>
    %296 = arith.mulf %295, %294 : vector<2x32xf32>
    %cst_112 = arith.constant 5.000000e-01 : f32
    %297 = vector.broadcast %cst_112 : f32 to vector<2x32xf32>
    %298 = arith.addf %296, %297 : vector<2x32xf32>
    %299 = vector.extract_strided_slice %288 {offsets = [0, 64], sizes = [2, 32], strides = [1, 1]} : vector<2x128xf32> to vector<2x32xf32>
    %300 = vector.extract_strided_slice %288 {offsets = [0, 96], sizes = [2, 32], strides = [1, 1]} : vector<2x128xf32> to vector<2x32xf32>
    %cst_113 = arith.constant 5.000000e-01 : f32
    %301 = vector.broadcast %cst_113 : f32 to vector<2x32xf32>
    %302 = arith.mulf %301, %300 : vector<2x32xf32>
    %cst_114 = arith.constant 5.000000e-01 : f32
    %303 = vector.broadcast %cst_114 : f32 to vector<2x32xf32>
    %304 = arith.addf %302, %303 : vector<2x32xf32>
    %305 = arith.mulf %298, %248 : vector<2x32xf32>
    %306 = arith.mulf %293, %299 : vector<2x32xf32>
    %307 = arith.addf %305, %306 : vector<2x32xf32>
    %308 = math.tanh %307 : vector<2x32xf32>
    %309 = arith.mulf %304, %308 : vector<2x32xf32>
    %310 = arith.truncf %309 : vector<2x32xf32> to vector<2x32xbf16>
    %cst_115 = arith.constant dense<0.000000e+00> : vector<2x128xf32>
    %311 = tpu.matmul %310, %33, %cst_115 {dimension_numbers = #tpu.dot_dimension_numbers<[1], [0], [0], [1], [0, 0, 1, 1], [], []>} : vector<2x32xbf16>, vector<32x128xbf16>, vector<2x128xf32> -> vector<2x128xf32>
    %312 = vector.broadcast %41 : vector<1x128xf32> to vector<2x128xf32>
    %313 = arith.addf %311, %312 : vector<2x128xf32>
    %314 = arith.truncf %279 : vector<2x32xf32> to vector<2x32xbf16>
    %cst_116 = arith.constant dense<0.000000e+00> : vector<2x128xf32>
    %315 = tpu.matmul %314, %37, %cst_116 {dimension_numbers = #tpu.dot_dimension_numbers<[1], [0], [0], [1], [0, 0, 1, 1], [], []>} : vector<2x32xbf16>, vector<32x128xbf16>, vector<2x128xf32> -> vector<2x128xf32>
    %316 = arith.addf %313, %315 : vector<2x128xf32>
    %317 = math.tanh %316 : vector<2x128xf32>
    %318 = vector.extract_strided_slice %317 {offsets = [0, 0], sizes = [2, 32], strides = [1, 1]} : vector<2x128xf32> to vector<2x32xf32>
    %cst_117 = arith.constant 5.000000e-01 : f32
    %319 = vector.broadcast %cst_117 : f32 to vector<2x32xf32>
    %320 = arith.mulf %319, %318 : vector<2x32xf32>
    %cst_118 = arith.constant 5.000000e-01 : f32
    %321 = vector.broadcast %cst_118 : f32 to vector<2x32xf32>
    %322 = arith.addf %320, %321 : vector<2x32xf32>
    %323 = vector.extract_strided_slice %317 {offsets = [0, 32], sizes = [2, 32], strides = [1, 1]} : vector<2x128xf32> to vector<2x32xf32>
    %cst_119 = arith.constant 5.000000e-01 : f32
    %324 = vector.broadcast %cst_119 : f32 to vector<2x32xf32>
    %325 = arith.mulf %324, %323 : vector<2x32xf32>
    %cst_120 = arith.constant 5.000000e-01 : f32
    %326 = vector.broadcast %cst_120 : f32 to vector<2x32xf32>
    %327 = arith.addf %325, %326 : vector<2x32xf32>
    %328 = vector.extract_strided_slice %317 {offsets = [0, 64], sizes = [2, 32], strides = [1, 1]} : vector<2x128xf32> to vector<2x32xf32>
    %329 = vector.extract_strided_slice %317 {offsets = [0, 96], sizes = [2, 32], strides = [1, 1]} : vector<2x128xf32> to vector<2x32xf32>
    %cst_121 = arith.constant 5.000000e-01 : f32
    %330 = vector.broadcast %cst_121 : f32 to vector<2x32xf32>
    %331 = arith.mulf %330, %329 : vector<2x32xf32>
    %cst_122 = arith.constant 5.000000e-01 : f32
    %332 = vector.broadcast %cst_122 : f32 to vector<2x32xf32>
    %333 = arith.addf %331, %332 : vector<2x32xf32>
    %334 = arith.mulf %327, %277 : vector<2x32xf32>
    %335 = arith.mulf %322, %328 : vector<2x32xf32>
    %336 = arith.addf %334, %335 : vector<2x32xf32>
    %337 = math.tanh %336 : vector<2x32xf32>
    %338 = arith.mulf %333, %337 : vector<2x32xf32>
    %339 = vector.extract_strided_slice %47 {offsets = [0, 4], sizes = [2, 1], strides = [1, 1]} : vector<2x8xf32> to vector<2x1xf32>
    %340 = vector.broadcast %339 : vector<2x1xf32> to vector<2x32xf32>
    %341 = arith.mulf %340, %338 : vector<2x32xf32>
    %342 = arith.addf %283, %341 : vector<2x32xf32>
    %343 = vector.extract_strided_slice %45 {offsets = [10, 0], sizes = [2, 128], strides = [1, 1]} : vector<16x128xf32> to vector<2x128xf32>
    %344 = arith.truncf %309 : vector<2x32xf32> to vector<2x32xbf16>
    %cst_123 = arith.constant dense<0.000000e+00> : vector<2x128xf32>
    %345 = tpu.matmul %344, %35, %cst_123 {dimension_numbers = #tpu.dot_dimension_numbers<[1], [0], [0], [1], [0, 0, 1, 1], [], []>} : vector<2x32xbf16>, vector<32x128xbf16>, vector<2x128xf32> -> vector<2x128xf32>
    %346 = arith.addf %343, %345 : vector<2x128xf32>
    %347 = math.tanh %346 : vector<2x128xf32>
    %348 = vector.extract_strided_slice %347 {offsets = [0, 0], sizes = [2, 32], strides = [1, 1]} : vector<2x128xf32> to vector<2x32xf32>
    %cst_124 = arith.constant 5.000000e-01 : f32
    %349 = vector.broadcast %cst_124 : f32 to vector<2x32xf32>
    %350 = arith.mulf %349, %348 : vector<2x32xf32>
    %cst_125 = arith.constant 5.000000e-01 : f32
    %351 = vector.broadcast %cst_125 : f32 to vector<2x32xf32>
    %352 = arith.addf %350, %351 : vector<2x32xf32>
    %353 = vector.extract_strided_slice %347 {offsets = [0, 32], sizes = [2, 32], strides = [1, 1]} : vector<2x128xf32> to vector<2x32xf32>
    %cst_126 = arith.constant 5.000000e-01 : f32
    %354 = vector.broadcast %cst_126 : f32 to vector<2x32xf32>
    %355 = arith.mulf %354, %353 : vector<2x32xf32>
    %cst_127 = arith.constant 5.000000e-01 : f32
    %356 = vector.broadcast %cst_127 : f32 to vector<2x32xf32>
    %357 = arith.addf %355, %356 : vector<2x32xf32>
    %358 = vector.extract_strided_slice %347 {offsets = [0, 64], sizes = [2, 32], strides = [1, 1]} : vector<2x128xf32> to vector<2x32xf32>
    %359 = vector.extract_strided_slice %347 {offsets = [0, 96], sizes = [2, 32], strides = [1, 1]} : vector<2x128xf32> to vector<2x32xf32>
    %cst_128 = arith.constant 5.000000e-01 : f32
    %360 = vector.broadcast %cst_128 : f32 to vector<2x32xf32>
    %361 = arith.mulf %360, %359 : vector<2x32xf32>
    %cst_129 = arith.constant 5.000000e-01 : f32
    %362 = vector.broadcast %cst_129 : f32 to vector<2x32xf32>
    %363 = arith.addf %361, %362 : vector<2x32xf32>
    %364 = arith.mulf %357, %307 : vector<2x32xf32>
    %365 = arith.mulf %352, %358 : vector<2x32xf32>
    %366 = arith.addf %364, %365 : vector<2x32xf32>
    %367 = math.tanh %366 : vector<2x32xf32>
    %368 = arith.mulf %363, %367 : vector<2x32xf32>
    %369 = arith.truncf %368 : vector<2x32xf32> to vector<2x32xbf16>
    %cst_130 = arith.constant dense<0.000000e+00> : vector<2x128xf32>
    %370 = tpu.matmul %369, %33, %cst_130 {dimension_numbers = #tpu.dot_dimension_numbers<[1], [0], [0], [1], [0, 0, 1, 1], [], []>} : vector<2x32xbf16>, vector<32x128xbf16>, vector<2x128xf32> -> vector<2x128xf32>
    %371 = vector.broadcast %41 : vector<1x128xf32> to vector<2x128xf32>
    %372 = arith.addf %370, %371 : vector<2x128xf32>
    %373 = arith.truncf %338 : vector<2x32xf32> to vector<2x32xbf16>
    %cst_131 = arith.constant dense<0.000000e+00> : vector<2x128xf32>
    %374 = tpu.matmul %373, %37, %cst_131 {dimension_numbers = #tpu.dot_dimension_numbers<[1], [0], [0], [1], [0, 0, 1, 1], [], []>} : vector<2x32xbf16>, vector<32x128xbf16>, vector<2x128xf32> -> vector<2x128xf32>
    %375 = arith.addf %372, %374 : vector<2x128xf32>
    %376 = math.tanh %375 : vector<2x128xf32>
    %377 = vector.extract_strided_slice %376 {offsets = [0, 0], sizes = [2, 32], strides = [1, 1]} : vector<2x128xf32> to vector<2x32xf32>
    %cst_132 = arith.constant 5.000000e-01 : f32
    %378 = vector.broadcast %cst_132 : f32 to vector<2x32xf32>
    %379 = arith.mulf %378, %377 : vector<2x32xf32>
    %cst_133 = arith.constant 5.000000e-01 : f32
    %380 = vector.broadcast %cst_133 : f32 to vector<2x32xf32>
    %381 = arith.addf %379, %380 : vector<2x32xf32>
    %382 = vector.extract_strided_slice %376 {offsets = [0, 32], sizes = [2, 32], strides = [1, 1]} : vector<2x128xf32> to vector<2x32xf32>
    %cst_134 = arith.constant 5.000000e-01 : f32
    %383 = vector.broadcast %cst_134 : f32 to vector<2x32xf32>
    %384 = arith.mulf %383, %382 : vector<2x32xf32>
    %cst_135 = arith.constant 5.000000e-01 : f32
    %385 = vector.broadcast %cst_135 : f32 to vector<2x32xf32>
    %386 = arith.addf %384, %385 : vector<2x32xf32>
    %387 = vector.extract_strided_slice %376 {offsets = [0, 64], sizes = [2, 32], strides = [1, 1]} : vector<2x128xf32> to vector<2x32xf32>
    %388 = vector.extract_strided_slice %376 {offsets = [0, 96], sizes = [2, 32], strides = [1, 1]} : vector<2x128xf32> to vector<2x32xf32>
    %cst_136 = arith.constant 5.000000e-01 : f32
    %389 = vector.broadcast %cst_136 : f32 to vector<2x32xf32>
    %390 = arith.mulf %389, %388 : vector<2x32xf32>
    %cst_137 = arith.constant 5.000000e-01 : f32
    %391 = vector.broadcast %cst_137 : f32 to vector<2x32xf32>
    %392 = arith.addf %390, %391 : vector<2x32xf32>
    %393 = arith.mulf %386, %336 : vector<2x32xf32>
    %394 = arith.mulf %381, %387 : vector<2x32xf32>
    %395 = arith.addf %393, %394 : vector<2x32xf32>
    %396 = math.tanh %395 : vector<2x32xf32>
    %397 = arith.mulf %392, %396 : vector<2x32xf32>
    %398 = vector.extract_strided_slice %47 {offsets = [0, 5], sizes = [2, 1], strides = [1, 1]} : vector<2x8xf32> to vector<2x1xf32>
    %399 = vector.broadcast %398 : vector<2x1xf32> to vector<2x32xf32>
    %400 = arith.mulf %399, %397 : vector<2x32xf32>
    %401 = arith.addf %342, %400 : vector<2x32xf32>
    %402 = vector.extract_strided_slice %45 {offsets = [12, 0], sizes = [2, 128], strides = [1, 1]} : vector<16x128xf32> to vector<2x128xf32>
    %403 = arith.truncf %368 : vector<2x32xf32> to vector<2x32xbf16>
    %cst_138 = arith.constant dense<0.000000e+00> : vector<2x128xf32>
    %404 = tpu.matmul %403, %35, %cst_138 {dimension_numbers = #tpu.dot_dimension_numbers<[1], [0], [0], [1], [0, 0, 1, 1], [], []>} : vector<2x32xbf16>, vector<32x128xbf16>, vector<2x128xf32> -> vector<2x128xf32>
    %405 = arith.addf %402, %404 : vector<2x128xf32>
    %406 = math.tanh %405 : vector<2x128xf32>
    %407 = vector.extract_strided_slice %406 {offsets = [0, 0], sizes = [2, 32], strides = [1, 1]} : vector<2x128xf32> to vector<2x32xf32>
    %cst_139 = arith.constant 5.000000e-01 : f32
    %408 = vector.broadcast %cst_139 : f32 to vector<2x32xf32>
    %409 = arith.mulf %408, %407 : vector<2x32xf32>
    %cst_140 = arith.constant 5.000000e-01 : f32
    %410 = vector.broadcast %cst_140 : f32 to vector<2x32xf32>
    %411 = arith.addf %409, %410 : vector<2x32xf32>
    %412 = vector.extract_strided_slice %406 {offsets = [0, 32], sizes = [2, 32], strides = [1, 1]} : vector<2x128xf32> to vector<2x32xf32>
    %cst_141 = arith.constant 5.000000e-01 : f32
    %413 = vector.broadcast %cst_141 : f32 to vector<2x32xf32>
    %414 = arith.mulf %413, %412 : vector<2x32xf32>
    %cst_142 = arith.constant 5.000000e-01 : f32
    %415 = vector.broadcast %cst_142 : f32 to vector<2x32xf32>
    %416 = arith.addf %414, %415 : vector<2x32xf32>
    %417 = vector.extract_strided_slice %406 {offsets = [0, 64], sizes = [2, 32], strides = [1, 1]} : vector<2x128xf32> to vector<2x32xf32>
    %418 = vector.extract_strided_slice %406 {offsets = [0, 96], sizes = [2, 32], strides = [1, 1]} : vector<2x128xf32> to vector<2x32xf32>
    %cst_143 = arith.constant 5.000000e-01 : f32
    %419 = vector.broadcast %cst_143 : f32 to vector<2x32xf32>
    %420 = arith.mulf %419, %418 : vector<2x32xf32>
    %cst_144 = arith.constant 5.000000e-01 : f32
    %421 = vector.broadcast %cst_144 : f32 to vector<2x32xf32>
    %422 = arith.addf %420, %421 : vector<2x32xf32>
    %423 = arith.mulf %416, %366 : vector<2x32xf32>
    %424 = arith.mulf %411, %417 : vector<2x32xf32>
    %425 = arith.addf %423, %424 : vector<2x32xf32>
    %426 = math.tanh %425 : vector<2x32xf32>
    %427 = arith.mulf %422, %426 : vector<2x32xf32>
    %428 = arith.truncf %427 : vector<2x32xf32> to vector<2x32xbf16>
    %cst_145 = arith.constant dense<0.000000e+00> : vector<2x128xf32>
    %429 = tpu.matmul %428, %33, %cst_145 {dimension_numbers = #tpu.dot_dimension_numbers<[1], [0], [0], [1], [0, 0, 1, 1], [], []>} : vector<2x32xbf16>, vector<32x128xbf16>, vector<2x128xf32> -> vector<2x128xf32>
    %430 = vector.broadcast %41 : vector<1x128xf32> to vector<2x128xf32>
    %431 = arith.addf %429, %430 : vector<2x128xf32>
    %432 = arith.truncf %397 : vector<2x32xf32> to vector<2x32xbf16>
    %cst_146 = arith.constant dense<0.000000e+00> : vector<2x128xf32>
    %433 = tpu.matmul %432, %37, %cst_146 {dimension_numbers = #tpu.dot_dimension_numbers<[1], [0], [0], [1], [0, 0, 1, 1], [], []>} : vector<2x32xbf16>, vector<32x128xbf16>, vector<2x128xf32> -> vector<2x128xf32>
    %434 = arith.addf %431, %433 : vector<2x128xf32>
    %435 = math.tanh %434 : vector<2x128xf32>
    %436 = vector.extract_strided_slice %435 {offsets = [0, 0], sizes = [2, 32], strides = [1, 1]} : vector<2x128xf32> to vector<2x32xf32>
    %cst_147 = arith.constant 5.000000e-01 : f32
    %437 = vector.broadcast %cst_147 : f32 to vector<2x32xf32>
    %438 = arith.mulf %437, %436 : vector<2x32xf32>
    %cst_148 = arith.constant 5.000000e-01 : f32
    %439 = vector.broadcast %cst_148 : f32 to vector<2x32xf32>
    %440 = arith.addf %438, %439 : vector<2x32xf32>
    %441 = vector.extract_strided_slice %435 {offsets = [0, 32], sizes = [2, 32], strides = [1, 1]} : vector<2x128xf32> to vector<2x32xf32>
    %cst_149 = arith.constant 5.000000e-01 : f32
    %442 = vector.broadcast %cst_149 : f32 to vector<2x32xf32>
    %443 = arith.mulf %442, %441 : vector<2x32xf32>
    %cst_150 = arith.constant 5.000000e-01 : f32
    %444 = vector.broadcast %cst_150 : f32 to vector<2x32xf32>
    %445 = arith.addf %443, %444 : vector<2x32xf32>
    %446 = vector.extract_strided_slice %435 {offsets = [0, 64], sizes = [2, 32], strides = [1, 1]} : vector<2x128xf32> to vector<2x32xf32>
    %447 = vector.extract_strided_slice %435 {offsets = [0, 96], sizes = [2, 32], strides = [1, 1]} : vector<2x128xf32> to vector<2x32xf32>
    %cst_151 = arith.constant 5.000000e-01 : f32
    %448 = vector.broadcast %cst_151 : f32 to vector<2x32xf32>
    %449 = arith.mulf %448, %447 : vector<2x32xf32>
    %cst_152 = arith.constant 5.000000e-01 : f32
    %450 = vector.broadcast %cst_152 : f32 to vector<2x32xf32>
    %451 = arith.addf %449, %450 : vector<2x32xf32>
    %452 = arith.mulf %445, %395 : vector<2x32xf32>
    %453 = arith.mulf %440, %446 : vector<2x32xf32>
    %454 = arith.addf %452, %453 : vector<2x32xf32>
    %455 = math.tanh %454 : vector<2x32xf32>
    %456 = arith.mulf %451, %455 : vector<2x32xf32>
    %457 = vector.extract_strided_slice %47 {offsets = [0, 6], sizes = [2, 1], strides = [1, 1]} : vector<2x8xf32> to vector<2x1xf32>
    %458 = vector.broadcast %457 : vector<2x1xf32> to vector<2x32xf32>
    %459 = arith.mulf %458, %456 : vector<2x32xf32>
    %460 = arith.addf %401, %459 : vector<2x32xf32>
    %461 = vector.extract_strided_slice %45 {offsets = [14, 0], sizes = [2, 128], strides = [1, 1]} : vector<16x128xf32> to vector<2x128xf32>
    %462 = arith.truncf %427 : vector<2x32xf32> to vector<2x32xbf16>
    %cst_153 = arith.constant dense<0.000000e+00> : vector<2x128xf32>
    %463 = tpu.matmul %462, %35, %cst_153 {dimension_numbers = #tpu.dot_dimension_numbers<[1], [0], [0], [1], [0, 0, 1, 1], [], []>} : vector<2x32xbf16>, vector<32x128xbf16>, vector<2x128xf32> -> vector<2x128xf32>
    %464 = arith.addf %461, %463 : vector<2x128xf32>
    %465 = math.tanh %464 : vector<2x128xf32>
    %466 = vector.extract_strided_slice %465 {offsets = [0, 0], sizes = [2, 32], strides = [1, 1]} : vector<2x128xf32> to vector<2x32xf32>
    %cst_154 = arith.constant 5.000000e-01 : f32
    %467 = vector.broadcast %cst_154 : f32 to vector<2x32xf32>
    %468 = arith.mulf %467, %466 : vector<2x32xf32>
    %cst_155 = arith.constant 5.000000e-01 : f32
    %469 = vector.broadcast %cst_155 : f32 to vector<2x32xf32>
    %470 = arith.addf %468, %469 : vector<2x32xf32>
    %471 = vector.extract_strided_slice %465 {offsets = [0, 32], sizes = [2, 32], strides = [1, 1]} : vector<2x128xf32> to vector<2x32xf32>
    %cst_156 = arith.constant 5.000000e-01 : f32
    %472 = vector.broadcast %cst_156 : f32 to vector<2x32xf32>
    %473 = arith.mulf %472, %471 : vector<2x32xf32>
    %cst_157 = arith.constant 5.000000e-01 : f32
    %474 = vector.broadcast %cst_157 : f32 to vector<2x32xf32>
    %475 = arith.addf %473, %474 : vector<2x32xf32>
    %476 = vector.extract_strided_slice %465 {offsets = [0, 64], sizes = [2, 32], strides = [1, 1]} : vector<2x128xf32> to vector<2x32xf32>
    %477 = vector.extract_strided_slice %465 {offsets = [0, 96], sizes = [2, 32], strides = [1, 1]} : vector<2x128xf32> to vector<2x32xf32>
    %cst_158 = arith.constant 5.000000e-01 : f32
    %478 = vector.broadcast %cst_158 : f32 to vector<2x32xf32>
    %479 = arith.mulf %478, %477 : vector<2x32xf32>
    %cst_159 = arith.constant 5.000000e-01 : f32
    %480 = vector.broadcast %cst_159 : f32 to vector<2x32xf32>
    %481 = arith.addf %479, %480 : vector<2x32xf32>
    %482 = arith.mulf %475, %425 : vector<2x32xf32>
    %483 = arith.mulf %470, %476 : vector<2x32xf32>
    %484 = arith.addf %482, %483 : vector<2x32xf32>
    %485 = math.tanh %484 : vector<2x32xf32>
    %486 = arith.mulf %481, %485 : vector<2x32xf32>
    %487 = arith.truncf %486 : vector<2x32xf32> to vector<2x32xbf16>
    %cst_160 = arith.constant dense<0.000000e+00> : vector<2x128xf32>
    %488 = tpu.matmul %487, %33, %cst_160 {dimension_numbers = #tpu.dot_dimension_numbers<[1], [0], [0], [1], [0, 0, 1, 1], [], []>} : vector<2x32xbf16>, vector<32x128xbf16>, vector<2x128xf32> -> vector<2x128xf32>
    %489 = vector.broadcast %41 : vector<1x128xf32> to vector<2x128xf32>
    %490 = arith.addf %488, %489 : vector<2x128xf32>
    %491 = arith.truncf %456 : vector<2x32xf32> to vector<2x32xbf16>
    %cst_161 = arith.constant dense<0.000000e+00> : vector<2x128xf32>
    %492 = tpu.matmul %491, %37, %cst_161 {dimension_numbers = #tpu.dot_dimension_numbers<[1], [0], [0], [1], [0, 0, 1, 1], [], []>} : vector<2x32xbf16>, vector<32x128xbf16>, vector<2x128xf32> -> vector<2x128xf32>
    %493 = arith.addf %490, %492 : vector<2x128xf32>
    %494 = math.tanh %493 : vector<2x128xf32>
    %495 = vector.extract_strided_slice %494 {offsets = [0, 0], sizes = [2, 32], strides = [1, 1]} : vector<2x128xf32> to vector<2x32xf32>
    %cst_162 = arith.constant 5.000000e-01 : f32
    %496 = vector.broadcast %cst_162 : f32 to vector<2x32xf32>
    %497 = arith.mulf %496, %495 : vector<2x32xf32>
    %cst_163 = arith.constant 5.000000e-01 : f32
    %498 = vector.broadcast %cst_163 : f32 to vector<2x32xf32>
    %499 = arith.addf %497, %498 : vector<2x32xf32>
    %500 = vector.extract_strided_slice %494 {offsets = [0, 32], sizes = [2, 32], strides = [1, 1]} : vector<2x128xf32> to vector<2x32xf32>
    %cst_164 = arith.constant 5.000000e-01 : f32
    %501 = vector.broadcast %cst_164 : f32 to vector<2x32xf32>
    %502 = arith.mulf %501, %500 : vector<2x32xf32>
    %cst_165 = arith.constant 5.000000e-01 : f32
    %503 = vector.broadcast %cst_165 : f32 to vector<2x32xf32>
    %504 = arith.addf %502, %503 : vector<2x32xf32>
    %505 = vector.extract_strided_slice %494 {offsets = [0, 64], sizes = [2, 32], strides = [1, 1]} : vector<2x128xf32> to vector<2x32xf32>
    %506 = vector.extract_strided_slice %494 {offsets = [0, 96], sizes = [2, 32], strides = [1, 1]} : vector<2x128xf32> to vector<2x32xf32>
    %cst_166 = arith.constant 5.000000e-01 : f32
    %507 = vector.broadcast %cst_166 : f32 to vector<2x32xf32>
    %508 = arith.mulf %507, %506 : vector<2x32xf32>
    %cst_167 = arith.constant 5.000000e-01 : f32
    %509 = vector.broadcast %cst_167 : f32 to vector<2x32xf32>
    %510 = arith.addf %508, %509 : vector<2x32xf32>
    %511 = arith.mulf %504, %454 : vector<2x32xf32>
    %512 = arith.mulf %499, %505 : vector<2x32xf32>
    %513 = arith.addf %511, %512 : vector<2x32xf32>
    %514 = math.tanh %513 : vector<2x32xf32>
    %515 = arith.mulf %510, %514 : vector<2x32xf32>
    %516 = vector.extract_strided_slice %47 {offsets = [0, 7], sizes = [2, 1], strides = [1, 1]} : vector<2x8xf32> to vector<2x1xf32>
    %517 = vector.broadcast %516 : vector<2x1xf32> to vector<2x32xf32>
    %518 = arith.mulf %517, %515 : vector<2x32xf32>
    %519 = arith.addf %460, %518 : vector<2x32xf32>
    %520 = arith.truncf %519 : vector<2x32xf32> to vector<2x32xbf16>
    %c0_168 = arith.constant 0 : index
    %c0_169 = arith.constant 0 : index
    %521 = vector.load %arg14[%c0_168, %c0_169] : memref<32x2xbf16, #tpu.memory_space<vmem>>, vector<32x2xbf16>
    %cst_170 = arith.constant dense<0.000000e+00> : vector<2x2xf32>
    %522 = tpu.matmul %520, %521, %cst_170 {dimension_numbers = #tpu.dot_dimension_numbers<[1], [0], [0], [1], [0, 0, 1, 1], [], []>} : vector<2x32xbf16>, vector<32x2xbf16>, vector<2x2xf32> -> vector<2x2xf32>
    %c0_171 = arith.constant 0 : index
    %c0_172 = arith.constant 0 : index
    %523 = vector.load %arg15[%c0_171, %c0_172] : memref<1x2xf32, #tpu.memory_space<vmem>>, vector<1x2xf32>
    %524 = vector.broadcast %523 : vector<1x2xf32> to vector<2x2xf32>
    %525 = arith.addf %522, %524 : vector<2x2xf32>
    %c0_173 = arith.constant 0 : index
    %c0_174 = arith.constant 0 : index
    %526 = vector.load %arg16[%c0_173, %c0_174] : memref<2x2xf32, #tpu.memory_space<vmem>>, vector<2x2xf32>
    tpu.vector_store %arg16[%c0_173, %c0_174], %525 {strides = array<i32>} : memref<2x2xf32, #tpu.memory_space<vmem>>, vector<2x2xf32>,
    return
  }
}

</mosaic_0001>

<bundles_post_ra>
// kernel: tpu_custom_call.1
= control target key start
LH: loop header
LB: loop body
LE: loop exit
PB: predicated region body
PF: predicated region fallthrough
CT: control target
= control target key end

     0   :  { %s2360_s0 = inlined_call_operand.hbm [shape: f32[2,8], index: 0, kind: input, shape index: {}]   ;;  %s2361_s1 = inlined_call_operand.hbm [shape: bf16[16,16], index: 1, kind: input, shape index: {}]   ;;  %s2362_s2 = inlined_call_operand.hbm [shape: bf16[16,32], index: 2, kind: input, shape index: {}]   ;;  %s2363_s3 = inlined_call_operand.vmem [shape: bf16[32,32], index: 3, kind: input, shape index: {}]   ;;  %s2364_s4 = inlined_call_operand.hbm [shape: f32[1,32], index: 4, kind: input, shape index: {}]   ;;  %s2365_s5 = inlined_call_operand.hbm [shape: bf16[1,32,32], index: 5, kind: input, shape index: {}]   ;;  %s2366_s6 = inlined_call_operand.hbm [shape: f32[1,1,32], index: 6, kind: input, shape index: {}]   ;;  %s2367_s7 = inlined_call_operand.hbm [shape: bf16[32,32], index: 7, kind: input, shape index: {}]   ;;  %s2368_s8 = inlined_call_operand.hbm [shape: f32[1,32], index: 8, kind: input, shape index: {}]   ;;  %s2369_s9 = inlined_call_operand.hbm [shape: bf16[2,16], index: 9, kind: input, shape index: {}]   ;;  %s2370_s10 = inlined_call_operand.vmem [shape: bf16[16,32], index: 10, kind: input, shape index: {}]   ;;  %s2371_s11 = inlined_call_operand.hbm [shape: bf16[2,32,128], index: 11, kind: input, shape index: {}]   ;;  %s2372_s12 = inlined_call_operand.hbm [shape: bf16[2,32,128], index: 12, kind: input, shape index: {}]   ;;  %s2373_s13 = inlined_call_operand.vmem [shape: f32[2,1,128], index: 13, kind: input, shape index: {}]   ;;  %s2374_s14 = inlined_call_operand.vmem [shape: bf16[32,2], index: 14, kind: input, shape index: {}]   ;;  %s2375_s15 = inlined_call_operand.vmem [shape: f32[1,2], index: 15, kind: input, shape index: {}]   ;;  %s2376_s16 = inlined_call_operand.hbm [shape: f32[2,2], index: 16, kind: output, shape index: {}]  }
   0x1   :  { %2377 = sst [smem:[#allocation28_spill]] %s2360_s0 }
   0x2   :  { %21 = vsyncpa [#allocation3], 0 }
   0x3   :  { %22 = vsyncpa [#allocation6], 0 }
   0x4   :  { %23 = vsyncpa [#allocation9], 0 }
   0x5   :  { %24 = vsyncpa [#allocation12], 0 }
   0x6   :  { %25 = vsyncpa [#allocation15], 0 }
   0x7   :  { %26 = vsyncpa [#allocation18], 0  ;;  %s43_s23 = sshll.u32 %s2361_s1, 4  ;;  %s44_s23 = int_to_ptr.hbm [resolvable:$true] %s43_s23 }
   0x8   :  { %27 = vsyncpa [#allocation4], 0  ;;  %s1949_s24 = smov [#allocation5]   ;;  %s72_s28 = sshll.u32 %s2364_s4, 4  ;;  %s73_s28 = int_to_ptr.hbm [resolvable:$true] %s72_s28 }
   0x9   :  { %s45_s25 = sshll.u32 %s1949_s24, 4  ;;  %s1950_s29 = smov 64   ;;  %s46_s25 = int_to_ptr.vmem [resolvable:$true] %s45_s25 }
   0xa   :  { %s1951_s30 = smov 4   ;;  %s1952_s0 = smov [#allocation8]  }
   0xb   :  { %51 = dma.hbm_to_vmem [thread:$0]  %s44_s23, 128, %s46_s25, [#allocation6], %s1950_s29, %s1950_s29, %s1951_s30  }
   0xc   :  { %s74_s17 = sshll.u32 %s1952_s0, 4  ;;  %s96_s19 = sshll.u32 %s2366_s6, 4  ;;  %s75_s17 = int_to_ptr.vmem [resolvable:$true] %s74_s17  ;;  %s97_s19 = int_to_ptr.hbm [resolvable:$true] %s96_s19 }
   0xd   :  { %77 = dma.hbm_to_vmem [thread:$0]  %s73_s28, 16, %s75_s17, [#allocation9]  }
   0xe   :  { %s120_s4 = sshll.u32 %s2368_s8, 4  ;;  %s1953_s22 = smov [#allocation11]   ;;  %s121_s4 = int_to_ptr.hbm [resolvable:$true] %s120_s4 }
   0xf   :  { %s98_s24 = sshll.u32 %s1953_s22, 4  ;;  %s1954_s23 = smov [#allocation14]   ;;  %s99_s24 = int_to_ptr.vmem [resolvable:$true] %s98_s24 }
  0x10   :  { %101 = dma.hbm_to_vmem [thread:$0]  %s97_s19, 16, %s99_s24, [#allocation12]  }
  0x11   :  { %s122_s25 = sshll.u32 %s1954_s23, 4  ;;  %s143_s0 = sshll.u32 %s2371_s11, 4  ;;  %s123_s25 = int_to_ptr.vmem [resolvable:$true] %s122_s25  ;;  %s144_s0 = int_to_ptr.hbm [resolvable:$true] %s143_s0 }
  0x12   :  { %125 = dma.hbm_to_vmem [thread:$0]  %s121_s4, 16, %s123_s25, [#allocation15]  }
  0x13   :  { %s2378_s17 = sld [smem:[#allocation28_spill]]  ;;  %s1955_s1 = smov [#allocation17]  }
  0x14   :  { %s145_s8 = sshll.u32 %s1955_s1, 4  ;;  %s1956_s19 = smov [#allocation2]   ;;  %s146_s8 = int_to_ptr.vmem [resolvable:$true] %s145_s8 }
  0x15   :  { %151 = dma.hbm_to_vmem [thread:$0]  %s144_s0, 512, %s146_s8, [#allocation18], %s1950_s29, %s1950_s29, %s1951_s30  }
  0x16   :  { %s35_s20 = sshll.u32 %s1956_s19, 4  ;;  %s56_s11 = sshll.u32 %s2362_s2, 4  ;;  %s36_s20 = int_to_ptr.vmem [resolvable:$true] %s35_s20  ;;  %s57_s11 = int_to_ptr.hbm [resolvable:$true] %s56_s11 }
  0x17   :  { %s82_s23 = sshll.u32 %s2365_s5, 4  ;;  %s1957_s25 = smov [#allocation7]   ;;  %s83_s23 = int_to_ptr.hbm [resolvable:$true] %s82_s23 }
  0x18   :  { %s58_s26 = sshll.u32 %s1957_s25, 4  ;;  %s1958_s27 = smov [#allocation10]   ;;  %s59_s26 = int_to_ptr.vmem [resolvable:$true] %s58_s26 }
  0x19   :  { %s33_s18 = sshll.u32 %s2378_s17, 4  ;;  %s84_s0 = sshll.u32 %s1958_s27, 4  ;;  %s34_s18 = int_to_ptr.hbm [resolvable:$true] %s33_s18  ;;  %s85_s0 = int_to_ptr.vmem [resolvable:$true] %s84_s0 }
  0x1a   :  { %38 = dma.hbm_to_vmem [thread:$0]  %s34_s18, 32, %s36_s20, [#allocation3]  }
  0x1b   :  { %64 = dma.hbm_to_vmem [thread:$0]  %s57_s11, 128, %s59_s26, [#allocation6], %s1950_s29, %s1950_s29, %s1951_s30  }
  0x1c   :  { %s106_s2 = sshll.u32 %s2367_s7, 4  ;;  %s131_s18 = sshll.u32 %s2369_s9, 4  ;;  %s107_s2 = int_to_ptr.hbm [resolvable:$true] %s106_s2  ;;  %s132_s18 = int_to_ptr.hbm [resolvable:$true] %s131_s18 }
  0x1d   :  { %90 = dma.hbm_to_vmem [thread:$0]  %s83_s23, 256, %s85_s0, [#allocation9], %s1950_s29, %s1950_s29, %s1951_s30  }
  0x1e   :  { %s1959_s1 = smov [#allocation13]   ;;  %s1960_s19 = smov [#allocation16]  }
  0x1f   :  { %s108_s8 = sshll.u32 %s1959_s1, 4  ;;  %s133_s7 = sshll.u32 %s1960_s19, 4  ;;  %s109_s8 = int_to_ptr.vmem [resolvable:$true] %s108_s8  ;;  %s134_s7 = int_to_ptr.vmem [resolvable:$true] %s133_s7 }
  0x20   :  { %114 = dma.hbm_to_vmem [thread:$0]  %s107_s2, 256, %s109_s8, [#allocation12], %s1950_s29, %s1950_s29, %s1951_s30  }
  0x21   :  { %s156_s22 = sshll.u32 %s2372_s12, 4  ;;  %s1961_s11 = smov [#allocation19]   ;;  %s157_s22 = int_to_ptr.hbm [resolvable:$true] %s156_s22 }
  0x22   :  { %136 = dma.hbm_to_vmem [thread:$0]  %s132_s18, 16, %s134_s7, [#allocation15]  }
  0x23   :  { %s158_s4 = sshll.u32 %s1961_s11, 4  ;;  %s159_s4 = int_to_ptr.vmem [resolvable:$true] %s158_s4 }
  0x24   :  { %164 = dma.hbm_to_vmem [thread:$0]  %s157_s22, 512, %s159_s4, [#allocation18], %s1950_s29, %s1950_s29, %s1951_s30  }
  0x25   :  { %1935 = dma.done.wait [#allocation3], 32  }
  0x26   :  { %1936 = vsyncadd [#allocation3], 4294967264 }
  0x27   :  { %1937 = dma.done.wait [#allocation6], 256  }
  0x28   :  { %1938 = vsyncadd [#allocation6], 4294967040 }
  0x29   :  { %1939 = dma.done.wait [#allocation9], 272  }
  0x2a   :  { %1940 = vsyncadd [#allocation9], 4294967024 }
  0x2b   :  { %1941 = dma.done.wait [#allocation12], 272  }
  0x2c   :  { %1942 = vsyncadd [#allocation12], 4294967024 }
  0x2d   :  { %1943 = dma.done.wait [#allocation15], 32  }
  0x2e   :  { %1944 = vsyncadd [#allocation15], 4294967264 }
  0x2f   :  { %1945 = dma.done.wait [#allocation18], 1024  }
  0x30   :  { %1946 = vsyncadd [#allocation18], 4294966272  ;;  %v1529_v0 = vld [vmem:[%s2363_s3 + $0x8] sm:$0xff]  ;;  %v1528_v1 = vld [vmem:[%s2363_s3] sm:$0xff]  ;;  %vm241_vm0 = vcmask 261120   ;;  %vm269_vm1 = vcmask 130048  }
  0x31   :  { %251 = vmatpush.bf16.msra.mxu0 %v1529_v0  ;;  %v1527_v2 = vld [vmem:[#allocation7] sm:$0xff]  ;;  %v1526_v6 = vld [vmem:[#allocation5] sm:$0xff]  ;;  %v1530_v8 = vld [vmem:[#allocation10] sm:$0xff]  ;;  %s1962_s26 = smov 32   ;;  %s1971_s5 = smov [#allocation20]   ;;  %vm1393_vm2 = vcmask 9216  }
  0x32   :  { %v1531_v7 = vld [vmem:[#allocation10 + $0x8] sm:$0xff]  ;;  %v1577_v10 = vld [vmem:[#allocation8] ss:$0 sm:$0xff]  ;;  %v1532_v21 = vld [vmem:[#allocation13] sm:$0xff]  ;;  %s1400_s17 = sshll.u32 %s1971_s5, 4  ;;  %s1402_s8 = sshll.u32 %s2376_s16, 4  ;;  %s1401_s17 = int_to_ptr.vmem [resolvable:$true] %s1400_s17  ;;  %s1403_s8 = int_to_ptr.hbm [resolvable:$true] %s1402_s8 }
  0x33   :  { %315 = vmatpush.bf16.msra.mxu2 %v1531_v7  ;;  %v1533_v20 = vld [vmem:[#allocation13 + $0x8] sm:$0xff]  ;;  %v1578_v23 = vld [vmem:[#allocation11] ss:$0 sm:$0xff]  ;;  %v376_v32 = vld [vmem:[#allocation16] sm:$0x1] }
  0x34   :  { %v2119_v28 = vld [vmem:[#allocation19 + $0x8] sm:$0xff]  ;;  %v2123_v34 = vld [vmem:[#allocation19 + $0x18] sm:$0xff]  ;;  %v1534_v35 = vld [vmem:[#allocation17] sm:$0xff] }
  0x35   :  { %252 = vmatpush.bf16.msra.mxu0 %v1528_v1  ;;  %v1535_v33 = vld [vmem:[#allocation17 + $0x8] sm:$0xff]  ;;  %v2130_v37 = vld [vmem:[#allocation19] sm:$0xff]  ;;  %v2132_v38 = vld [vmem:[#allocation19 + $0x10] sm:$0xff] }
  0x36   :  { %v1542_v36 = vld [vmem:[%s2370_s10] sm:$0xff]  ;;  %v1579_v39 = vld [vmem:[#allocation14] ss:$0 sm:$0xff]  ;;  %v2158_v63 = vld [vmem:[#allocation17 + $0x10] sm:$0xff] }
  0x37   :  { %316 = vmatpush.bf16.msra.mxu2 %v1530_v8  ;;  %v2145_v44 = vld [vmem:[%s2373_s13] ss:$0 sm:$0xff]  ;;  %v2155_v62 = vld [vmem:[#allocation17 + $0x18] sm:$0xff] }
  0x38   :  { %1429 = vmatmul.msk.bf16.vlgmr.msra.gmra.mxu0 %vm241_vm0, %v1527_v2 }
  0x39   :  { %450 = vmatpush.bf16.msrb.mxu0 %v1535_v33 }
  0x3b   :  { %481 = vmatpush.bf16.msrb.mxu2 %v2119_v28 }
  0x3d   :  { %451 = vmatpush.bf16.msrb.mxu0 %v1534_v35 }
  0x3f   :  { %482 = vmatpush.bf16.msrb.mxu2 %v2130_v37 }
  0x41   :  { %607 = vmatpush.bf16.msra.mxu0 %v2119_v28 }
  0x45   :  { %608 = vmatpush.bf16.msra.mxu0 %v2130_v37 }
  0x48   :  { %1468 = vmatmul.msk.bf16.vlgmr.msrb.gmra.mxu0 %vm241_vm0, %v1542_v36 }
  0x49   :  { %763 = vmatpush.bf16.msrb.mxu0 %v2155_v62 }
  0x4d   :  { %764 = vmatpush.bf16.msrb.mxu0 %v2158_v63 }
  0xb5   :  { %v254_v3 = vpop.f32.mrf.mxu0 }
  0xbd   :  { %v256_v4 = vpop.f32.mrf.mxu0 }
  0xbe   :  { %v259_v5 = vpack.c.bf16 %v256_v4, %v254_v3 }
  0xc0   :  { %280 = vmatpush.bf16.msra.mxu1 %v259_v5  ;;  %v2183_v5 = vld [vmem:[%s2373_s13 + $0x1] ss:$0 sm:$0xff] }
  0xc3   :  { %1434 = vmatmul.msk.bf16.vlgmr.msra.gmra.mxu1 %vm269_vm1, %v1526_v6 }
  0xc4   :  { %368 = vmatpush.bf16.msrb.mxu1 %v1533_v20 }
  0xc5   :  { %v453_v45 = vpop.f32.mrf.mxu0 }
  0xc6   :  { %v2148_v46 = vadd.f32 %v2145_v44, %v453_v45 }
  0xc8   :  { %369 = vmatpush.bf16.msrb.mxu1 %v1532_v21 }
  0xcc   :  { %541 = vmatpush.bf16.msra.mxu1 %v2155_v62 }
  0xcd   :  { %v2178_v4 = vpop.f32.mrf.mxu0 }
  0xd0   :  { %542 = vmatpush.bf16.msra.mxu1 %v2158_v63 }
 0x140   :  { %v282_v9 = vpop.f32.mrf.mxu1 }
 0x141   :  { %v283_v11 = vadd.f32 %v1577_v10, %v282_v9 }
 0x143   :  { %v287_v14 = vmax.f32 %v283_v11, 0.0 }
 0x148   :  { %v284_v12 = vpop.f32.mrf.mxu1 }
 0x149   :  { %v285_v13 = vadd.f32 %v1577_v10, %v284_v12 }
 0x14b   :  { %v288_v15 = vmax.f32 %v285_v13, 0.0 }
 0x14d   :  { %v289_v16 = vpack.c.bf16 %v288_v15, %v287_v14 }
 0x14f   :  { %1443 = vmatmul.msk.bf16.vlgmr.msra.gmra.mxu2 %vm241_vm0, %v289_v16 }
 0x150   :  { %655 = vmatpush.bf16.msra.mxu2 %v2155_v62 }
 0x154   :  { %656 = vmatpush.bf16.msra.mxu2 %v2158_v63 }
 0x1d2   :  { %v318_v17 = vpop.f32.mrf.mxu2 }
 0x1da   :  { %v320_v18 = vpop.f32.mrf.mxu2 }
 0x1db   :  { %v323_v19 = vpack.c.bf16 %v320_v18, %v318_v17 }
 0x1dd   :  { %335 = vmatpush.bf16.msra.mxu3 %v323_v19 }
 0x1e0   :  { %1444 = vmatmul.msk.bf16.vlgmr.msra.gmra.mxu3 %vm269_vm1, %v1526_v6 }
 0x263   :  { %v337_v22 = vpop.f32.mrf.mxu3 }
 0x264   :  { %v338_v25 = vadd.f32 %v1578_v23, %v337_v22 }
 0x26b   :  { %v339_v24 = vpop.f32.mrf.mxu3 }
 0x26c   :  { %v340_v26 = vadd.f32 %v1578_v23, %v339_v24 }
 0x26e   :  { %v342_v27 = vpack.c.bf16 %v340_v26, %v338_v25 }
 0x270   :  { %1453 = vmatmul.msk.bf16.vlgmr.msrb.gmra.mxu1 %vm241_vm0, %v342_v27 }
 0x271   :  { %675 = vmatpush.bf16.msrb.mxu1 %v2123_v34 }
 0x275   :  { %676 = vmatpush.bf16.msrb.mxu1 %v2132_v38 }
 0x2ed   :  { %v371_v29 = vpop.f32.mrf.mxu1 }
 0x2f5   :  { %v373_v30 = vpop.f32.mrf.mxu1 }
 0x2f6   :  { %v377_v31 = vpack.c.bf16 %v373_v30, %v371_v29 }
 0x2f8   :  { %392 = vmatpush.bf16.msrb.mxu3 %v377_v31 }
 0x2fb   :  { %1454 = vmatmul.msk.bf16.vlgmr.msrb.gmra.mxu3 %vm269_vm1, %v376_v32 }
 0x2fc   :  { %566 = vmatpush.bf16.msra.mxu3 %v2123_v34 }
 0x300   :  { %567 = vmatpush.bf16.msra.mxu3 %v2132_v38 }
 0x304   :  { %715 = vmatpush.bf16.msrb.mxu3 %v2119_v28 }
 0x308   :  { %716 = vmatpush.bf16.msrb.mxu3 %v2130_v37 }
 0x37e   :  { %v394_v40 = vpop.f32.mrf.mxu3 }
 0x37f   :  { %v395_v41 = vadd.f32 %v1579_v39, %v394_v40 }
 0x381   :  { %v459_v42 = vpack.c.bf16 %v395_v41, %v395_v41 }
 0x383   :  { %1477 = vmatmul.msk.bf16.vlgmr.msrb.gmra.mxu2 %vm241_vm0, %v459_v42  ;;  %1495 = vmatmul.msk.bf16.vlgmr.msra.gmra.mxu3 %vm241_vm0, %v459_v42 }
 0x384   :  { %871 = vmatpush.bf16.msra.mxu3 %v2155_v62  ;;  %783 = vmatpush.bf16.msrb.mxu2 %v2123_v34 }
 0x386   :  { %v396_v43 = vpop.f32.mrf.mxu3 }
 0x388   :  { %872 = vmatpush.bf16.msra.mxu3 %v2158_v63  ;;  %784 = vmatpush.bf16.msrb.mxu2 %v2132_v38 }
 0x406   :  { %v484_v47 = vpop.f32.mrf.mxu2  ;;  %v569_v48 = vpop.f32.mrf.mxu3 }
 0x407   :  { %v488_v49 = vadd.f32 %v484_v47, %v2148_v46 }
 0x409   :  { %1583 = vtanh.f32 %v488_v49 }
 0x40e   :  { %v486_v50 = vpop.f32.mrf.mxu2  ;;  %v571_v51 = vpop.f32.mrf.mxu3 }
 0x40f   :  { %v1584_v52 = vpop.eup %1583 }
 0x410   :  { %498 = vrot.lane.b32.xlu0 %v1584_v52, %s1950_s29  ;;  %v490_v53 = vmul.f32 0.5, %v1584_v52 }
 0x412   :  { %v491_v54 = vadd.f32 0.5, %v490_v53 }
 0x418   :  { %493 = vrot.lane.b32.xlu0 %v395_v41, %s1962_s26 }
 0x482   :  { %v499_v55 = vpop.permute.xlu0 %498 }
 0x483   :  { %v501_v56 = vmul.f32 %v499_v55, %v491_v54 }
 0x485   :  { %503 = vrot.lane.b32.xlu1 %v501_v56, %s1962_s26 }
 0x48a   :  { %v494_v57 = vpop.permute.xlu0 %493 }
 0x48b   :  { %v496_v58 = vmul.f32 %v494_v57, %v491_v54 }
 0x4f7   :  { %v504_v59 = vpop.permute.xlu1 %503 }
 0x4f8   :  { %v506_v60 = vadd.f32 %v504_v59, %v496_v58 }
 0x4fa   :  { %1585 = vtanh.f32 %v506_v60  ;;  %v622_v24 = vrot.slane %v506_v60, 6 }
 0x500   :  { %v1586_v61 = vpop.eup %1585 }
 0x501   :  { %509 = vrot.lane.b32.xlu1 %v1586_v61, %s1950_s29 }
 0x573   :  { %v510_v0 = vpop.permute.xlu1 %509 }
 0x574   :  { %v512_v1 = vmul.f32 %v510_v0, %v491_v54 }
 0x576   :  { %v513_v2 = vpack.c.bf16 %v512_v1, %v512_v1 }
 0x578   :  { %518 = vrot.lane.b32.xlu2 %v513_v2, %s1962_s26 }
 0x5d2   :  { %v519_v3 = vpop.permute.xlu2 %518 }
 0x5d3   :  { %1486 = vmatmul.msk.bf16.vlgmr.msra.gmra.mxu1 %vm241_vm0, %v519_v3  ;;  %1496 = vmatmul.msk.bf16.vlgmr.msra.gmra.mxu0 %vm241_vm0, %v519_v3 }
 0x5d4   :  { %823 = vmatpush.bf16.msra.mxu1 %v2119_v28  ;;  %891 = vmatpush.bf16.msra.mxu0 %v2123_v34 }
 0x5d8   :  { %824 = vmatpush.bf16.msra.mxu1 %v2130_v37  ;;  %892 = vmatpush.bf16.msra.mxu0 %v2132_v38 }
 0x650   :  { %v544_v6 = vpop.f32.mrf.mxu1  ;;  %v610_v7 = vpop.f32.mrf.mxu0 }
 0x651   :  { %v545_v8 = vadd.f32 %v2183_v5, %v544_v6  ;;  %v615_v9 = vrot.slane %v610_v7, 6 }
 0x653   :  { %v573_v10 = vadd.f32 %v569_v48, %v545_v8  ;;  %v617_v11 = vadd.f32 %v615_v9, %v2148_v46 }
 0x655   :  { %1587 = vtanh.f32 %v573_v10 }
 0x656   :  { %1589 = vtanh.f32 %v617_v11 }
 0x658   :  { %v546_v12 = vpop.f32.mrf.mxu1  ;;  %v612_v13 = vpop.f32.mrf.mxu0 }
 0x65b   :  { %v1588_v14 = vpop.eup %1587 }
 0x65c   :  { %v1590_v15 = vpop.eup %1589  ;;  %579 = vrot.lane.b32.xlu0 %v1588_v14, %s1950_s29  ;;  %v575_v20 = vmul.f32 0.5, %v1588_v14 }
 0x65d   :  { %626 = vrot.lane.b32.xlu2 %v1590_v15, %s1950_s29  ;;  %v619_v16 = vmul.f32 0.5, %v1590_v15 }
 0x65e   :  { %v576_v21 = vadd.f32 0.5, %v575_v20 }
 0x65f   :  { %v620_v17 = vadd.f32 0.5, %v619_v16 }
 0x660   :  { %v577_v25 = vmul.f32 %v576_v21, %v494_v57 }
 0x661   :  { %v624_v26 = vmul.f32 %v622_v24, %v620_v17 }
 0x6b7   :  { %v627_v18 = vpop.permute.xlu2 %626 }
 0x6b8   :  { %v629_v19 = vmul.f32 %v627_v18, %v620_v17 }
 0x6ba   :  { %631 = vrot.lane.b32.xlu1 %v629_v19, %s1962_s26 }
 0x6ce   :  { %v580_v22 = vpop.permute.xlu0 %579 }
 0x6cf   :  { %v582_v23 = vmul.f32 %v580_v22, %v576_v21 }
 0x6d1   :  { %584 = vrot.lane.b32.xlu2 %v582_v23, %s1962_s26 }
 0x72b   :  { %v585_v27 = vpop.permute.xlu2 %584 }
 0x72c   :  { %v632_v29 = vpop.permute.xlu1 %631  ;;  %v587_v30 = vadd.f32 %v585_v27, %v577_v25 }
 0x72d   :  { %v634_v31 = vadd.f32 %v632_v29, %v624_v26 }
 0x72e   :  { %1591 = vtanh.f32 %v587_v30 }
 0x72f   :  { %1593 = vtanh.f32 %v634_v31  ;;  %v730_v11 = vrot.slane %v634_v31, 6 }
 0x734   :  { %v1592_v32 = vpop.eup %1591 }
 0x735   :  { %v1594_v33 = vpop.eup %1593  ;;  %590 = vrot.lane.b32.xlu1 %v1592_v32, %s1950_s29 }
 0x736   :  { %637 = vrot.lane.b32.xlu0 %v1594_v33, %s1950_s29 }
 0x7a7   :  { %v591_v35 = vpop.permute.xlu1 %590 }
 0x7a8   :  { %v638_v36 = vpop.permute.xlu0 %637  ;;  %v2193_v39 = vmul.f32 %v591_v35, %v576_v21 }
 0x7a9   :  { %v640_v40 = vmul.f32 %v638_v36, %v620_v17 }
 0x7aa   :  { %v662_v41 = vpack.c.bf16 %v2193_v39, %v2193_v39 }
 0x7ab   :  { %v641_v42 = vpack.c.bf16 %v640_v40, %v640_v40 }
 0x7ac   :  { %664 = vrot.lane.b32.xlu0 %v662_v41, %s1962_s26 }
 0x7ad   :  { %v643_v43 = vrot.slane %v641_v42, 1 }
 0x7af   :  { %644 = vrot.lane.b32.xlu2 %v643_v43, %s1962_s26 }
 0x809   :  { %v645_v45 = vpop.permute.xlu2 %644 }
 0x80a   :  { %1497 = vmatmul.msk.bf16.vlgmr.msra.gmra.mxu2 %vm241_vm0, %v645_v45  ;;  %1499 = vmatmul.msk.bf16.vlgmr.msrb.gmra.mxu3 %vm241_vm0, %v645_v45 }
 0x80b   :  { %931 = vmatpush.bf16.msra.mxu2 %v2119_v28  ;;  %995 = vmatpush.bf16.msrb.mxu3 %v2123_v34 }
 0x80f   :  { %932 = vmatpush.bf16.msra.mxu2 %v2130_v37  ;;  %996 = vmatpush.bf16.msrb.mxu3 %v2132_v38 }
 0x81e   :  { %v665_v47 = vpop.permute.xlu0 %664 }
 0x81f   :  { %1498 = vmatmul.msk.bf16.vlgmr.msrb.gmra.mxu1 %vm241_vm0, %v665_v47 }
 0x820   :  { %975 = vmatpush.bf16.msrb.mxu1 %v2155_v62 }
 0x824   :  { %976 = vmatpush.bf16.msrb.mxu1 %v2158_v63 }
 0x88d   :  { %v658_v48 = vpop.f32.mrf.mxu2  ;;  %v718_v49 = vpop.f32.mrf.mxu3 }
 0x88e   :  { %v723_v50 = vrot.slane %v718_v49, 4  ;;  %v659_v55 = vadd.f32 %v2183_v5, %v658_v48 }
 0x890   :  { %v725_v51 = vadd.f32 %v723_v50, %v2148_v46 }
 0x892   :  { %1595 = vtanh.f32 %v725_v51 }
 0x895   :  { %v660_v52 = vpop.f32.mrf.mxu2  ;;  %v720_v53 = vpop.f32.mrf.mxu3 }
 0x898   :  { %v1596_v54 = vpop.eup %1595 }
 0x899   :  { %734 = vrot.lane.b32.xlu1 %v1596_v54, %s1950_s29  ;;  %v727_v2 = vmul.f32 0.5, %v1596_v54 }
 0x89b   :  { %v728_v3 = vadd.f32 0.5, %v727_v2 }
 0x89c   :  { %v678_v56 = vpop.f32.mrf.mxu1 }
 0x89d   :  { %v682_v57 = vadd.f32 %v678_v56, %v659_v55  ;;  %v732_v13 = vmul.f32 %v730_v11, %v728_v3  ;;  %v2260_v11 = vadd.f32 %v2145_v44, %v2178_v4 }
 0x89f   :  { %1597 = vtanh.f32 %v682_v57 }
 0x8a4   :  { %v680_v58 = vpop.f32.mrf.mxu1 }
 0x8a5   :  { %v1598_v59 = vpop.eup %1597 }
 0x8a6   :  { %688 = vrot.lane.b32.xlu2 %v1598_v59, %s1950_s29  ;;  %v684_v60 = vmul.f32 0.5, %v1598_v59 }
 0x8a8   :  { %v685_v61 = vadd.f32 0.5, %v684_v60 }
 0x8aa   :  { %v686_v8 = vmul.f32 %v685_v61, %v587_v30 }
 0x900   :  { %v689_v0 = vpop.permute.xlu2 %688 }
 0x901   :  { %v691_v1 = vmul.f32 %v689_v0, %v685_v61 }
 0x903   :  { %693 = vrot.lane.b32.xlu1 %v691_v1, %s1962_s26 }
 0x90b   :  { %v735_v6 = vpop.permute.xlu1 %734 }
 0x90c   :  { %v737_v7 = vmul.f32 %v735_v6, %v728_v3 }
 0x90e   :  { %739 = vrot.lane.b32.xlu0 %v737_v7, %s1962_s26 }
 0x975   :  { %v694_v9 = vpop.permute.xlu1 %693 }
 0x976   :  { %v2214_v10 = vadd.f32 %v694_v9, %v686_v8 }
 0x978   :  { %1599 = vtanh.f32 %v2214_v10 }
 0x97e   :  { %v1600_v12 = vpop.eup %1599 }
 0x97f   :  { %699 = vrot.lane.b32.xlu0 %v1600_v12, %s1950_s29 }
 0x980   :  { %v740_v14 = vpop.permute.xlu0 %739 }
 0x981   :  { %v742_v15 = vadd.f32 %v740_v14, %v732_v13 }
 0x983   :  { %1601 = vtanh.f32 %v742_v15 }
 0x989   :  { %v1602_v16 = vpop.eup %1601 }
 0x98a   :  { %745 = vrot.lane.b32.xlu2 %v1602_v16, %s1950_s29 }
 0x9e4   :  { %v746_v17 = vpop.permute.xlu2 %745 }
 0x9e5   :  { %v748_v18 = vmul.f32 %v746_v17, %v728_v3 }
 0x9e7   :  { %v749_v19 = vpack.c.bf16 %v748_v18, %v748_v18 }
 0x9e9   :  { %v751_v20 = vrot.slane %v749_v19, 2 }
 0x9eb   :  { %752 = vrot.lane.b32.xlu1 %v751_v20, %s1962_s26 }
 0x9f1   :  { %v700_v21 = vpop.permute.xlu0 %699 }
 0x9f2   :  { %v2220_v22 = vmul.f32 %v700_v21, %v685_v61 }
 0x9f4   :  { %v770_v23 = vpack.c.bf16 %v2220_v22, %v2220_v22 }
 0x9f6   :  { %772 = vrot.lane.b32.xlu2 %v770_v23, %s1962_s26 }
 0xa50   :  { %v773_v24 = vpop.permute.xlu2 %772 }
 0xa51   :  { %1501 = vmatmul.msk.bf16.vlgmr.msrb.gmra.mxu2 %vm241_vm0, %v773_v24 }
 0xa52   :  { %1083 = vmatpush.bf16.msrb.mxu2 %v2155_v62 }
 0xa56   :  { %1084 = vmatpush.bf16.msrb.mxu2 %v2158_v63 }
 0xa5d   :  { %v753_v25 = vpop.permute.xlu1 %752 }
 0xa5e   :  { %1500 = vmatmul.msk.bf16.vlgmr.msrb.gmra.mxu0 %vm241_vm0, %v753_v25  ;;  %1502 = vmatmul.msk.bf16.vlgmr.msra.gmra.mxu1 %vm241_vm0, %v753_v25 }
 0xa5f   :  { %1035 = vmatpush.bf16.msrb.mxu0 %v2119_v28  ;;  %1103 = vmatpush.bf16.msra.mxu1 %v2123_v34 }
 0xa63   :  { %1036 = vmatpush.bf16.msrb.mxu0 %v2130_v37  ;;  %1104 = vmatpush.bf16.msra.mxu1 %v2132_v38 }
 0xad4   :  { %v786_v26 = vpop.f32.mrf.mxu2 }
 0xadb   :  { %v766_v27 = vpop.f32.mrf.mxu0  ;;  %v826_v29 = vpop.f32.mrf.mxu1 }
 0xadc   :  { %v767_v30 = vadd.f32 %v2183_v5, %v766_v27  ;;  %v831_v31 = vrot.slane %v826_v29, 2  ;;  %v788_v32 = vpop.f32.mrf.mxu2 }
 0xade   :  { %v790_v33 = vadd.f32 %v786_v26, %v767_v30  ;;  %v833_v35 = vadd.f32 %v831_v31, %v2148_v46  ;;  %v838_v46 = vrot.slane %v742_v15, 6 }
 0xae0   :  { %1603 = vtanh.f32 %v790_v33 }
 0xae1   :  { %1605 = vtanh.f32 %v833_v35 }
 0xae3   :  { %v768_v36 = vpop.f32.mrf.mxu0  ;;  %v828_v40 = vpop.f32.mrf.mxu1 }
 0xae6   :  { %v1604_v41 = vpop.eup %1603 }
 0xae7   :  { %v1606_v42 = vpop.eup %1605  ;;  %796 = vrot.lane.b32.xlu1 %v1604_v41, %s1950_s29  ;;  %v792_v43 = vmul.f32 0.5, %v1604_v41 }
 0xae8   :  { %842 = vrot.lane.b32.xlu0 %v1606_v42, %s1950_s29  ;;  %v835_v45 = vmul.f32 0.5, %v1606_v42 }
 0xae9   :  { %v793_v47 = vadd.f32 0.5, %v792_v43 }
 0xaea   :  { %v836_v49 = vadd.f32 0.5, %v835_v45 }
 0xaeb   :  { %v794_v57 = vmul.f32 %v793_v47, %v2214_v10 }
 0xaec   :  { %v840_v53 = vmul.f32 %v838_v46, %v836_v49 }
 0xb59   :  { %v797_v48 = vpop.permute.xlu1 %796 }
 0xb5a   :  { %v799_v50 = vmul.f32 %v797_v48, %v793_v47  ;;  %v843_v51 = vpop.permute.xlu0 %842 }
 0xb5b   :  { %v845_v52 = vmul.f32 %v843_v51, %v836_v49 }
 0xb5c   :  { %801 = vrot.lane.b32.xlu0 %v799_v50, %s1962_s26 }
 0xb5d   :  { %847 = vrot.lane.b32.xlu2 %v845_v52, %s1962_s26 }
 0xbb7   :  { %v848_v54 = vpop.permute.xlu2 %847 }
 0xbb8   :  { %v850_v55 = vadd.f32 %v848_v54, %v840_v53 }
 0xbba   :  { %1607 = vtanh.f32 %v850_v55  ;;  %v943_v30 = vrot.slane %v850_v55, 6 }
 0xbc0   :  { %v1608_v56 = vpop.eup %1607 }
 0xbc1   :  { %853 = vrot.lane.b32.xlu1 %v1608_v56, %s1950_s29 }
 0xbce   :  { %v802_v58 = vpop.permute.xlu0 %801 }
 0xbcf   :  { %v804_v59 = vadd.f32 %v802_v58, %v794_v57 }
 0xbd1   :  { %1609 = vtanh.f32 %v804_v59 }
 0xbd7   :  { %v1610_v60 = vpop.eup %1609 }
 0xbd8   :  { %807 = vrot.lane.b32.xlu2 %v1610_v60, %s1950_s29 }
 0xc32   :  { %v808_v61 = vpop.permute.xlu2 %807 }
 0xc33   :  { %v854_v0 = vpop.permute.xlu1 %853  ;;  %v2243_v1 = vmul.f32 %v808_v61, %v793_v47 }
 0xc34   :  { %v856_v2 = vmul.f32 %v854_v0, %v836_v49 }
 0xc35   :  { %v878_v3 = vpack.c.bf16 %v2243_v1, %v2243_v1 }
 0xc36   :  { %v857_v6 = vpack.c.bf16 %v856_v2, %v856_v2 }
 0xc37   :  { %880 = vrot.lane.b32.xlu1 %v878_v3, %s1962_s26 }
 0xc38   :  { %v859_v7 = vrot.slane %v857_v6, 3 }
 0xc3a   :  { %860 = vrot.lane.b32.xlu0 %v859_v7, %s1962_s26 }
 0xca9   :  { %v881_v8 = vpop.permute.xlu1 %880 }
 0xcaa   :  { %1504 = vmatmul.msk.bf16.vlgmr.msra.gmra.mxu0 %vm241_vm0, %v881_v8 }
 0xcab   :  { %1191 = vmatpush.bf16.msra.mxu0 %v2155_v62 }
 0xcac   :  { %v861_v9 = vpop.permute.xlu0 %860 }
 0xcad   :  { %1503 = vmatmul.msk.bf16.vlgmr.msra.gmra.mxu3 %vm241_vm0, %v861_v9  ;;  %1505 = vmatmul.msk.bf16.vlgmr.msra.gmra.mxu2 %vm241_vm0, %v861_v9 }
 0xcae   :  { %1143 = vmatpush.bf16.msra.mxu3 %v2119_v28  ;;  %1211 = vmatpush.bf16.msra.mxu2 %v2123_v34 }
 0xcaf   :  { %1192 = vmatpush.bf16.msra.mxu0 %v2158_v63 }
 0xcb2   :  { %1144 = vmatpush.bf16.msra.mxu3 %v2130_v37  ;;  %1212 = vmatpush.bf16.msra.mxu2 %v2132_v38 }
 0xd27   :  { %v894_v10 = vpop.f32.mrf.mxu0 }
 0xd2f   :  { %v896_v12 = vpop.f32.mrf.mxu0 }
 0xd30   :  { %v874_v13 = vpop.f32.mrf.mxu3  ;;  %v934_v14 = vpop.f32.mrf.mxu2 }
 0xd31   :  { %v875_v15 = vadd.f32 %v2183_v5, %v874_v13  ;;  %v938_v16 = vadd.f32 %v934_v14, %v2260_v11 }
 0xd33   :  { %v898_v17 = vadd.f32 %v894_v10, %v875_v15  ;;  %1611 = vtanh.f32 %v938_v16 }
 0xd35   :  { %1613 = vtanh.f32 %v898_v17 }
 0xd38   :  { %v876_v18 = vpop.f32.mrf.mxu3  ;;  %v936_v19 = vpop.f32.mrf.mxu2 }
 0xd39   :  { %v1612_v20 = vpop.eup %1611 }
 0xd3a   :  { %947 = vrot.lane.b32.xlu2 %v1612_v20, %s1950_s29  ;;  %v940_v44 = vmul.f32 0.5, %v1612_v20 }
 0xd3b   :  { %v1614_v21 = vpop.eup %1613 }
 0xd3c   :  { %904 = vrot.lane.b32.xlu0 %v1614_v21, %s1950_s29  ;;  %v941_v4 = vadd.f32 0.5, %v940_v44  ;;  %v900_v25 = vmul.f32 0.5, %v1614_v21 }
 0xd3e   :  { %v901_v26 = vadd.f32 0.5, %v900_v25  ;;  %v945_v31 = vmul.f32 %v943_v30, %v941_v4 }
 0xd40   :  { %v902_v35 = vmul.f32 %v901_v26, %v804_v59 }
 0xd94   :  { %v948_v23 = vpop.permute.xlu2 %947 }
 0xd95   :  { %v950_v24 = vmul.f32 %v948_v23, %v941_v4 }
 0xd97   :  { %952 = vrot.lane.b32.xlu1 %v950_v24, %s1962_s26 }
 0xdae   :  { %v905_v27 = vpop.permute.xlu0 %904 }
 0xdaf   :  { %v907_v29 = vmul.f32 %v905_v27, %v901_v26 }
 0xdb1   :  { %909 = vrot.lane.b32.xlu2 %v907_v29, %s1962_s26 }
 0xe09   :  { %v953_v32 = vpop.permute.xlu1 %952 }
 0xe0a   :  { %v955_v33 = vadd.f32 %v953_v32, %v945_v31 }
 0xe0b   :  { %v910_v36 = vpop.permute.xlu2 %909 }
 0xe0c   :  { %1615 = vtanh.f32 %v955_v33  ;;  %v912_v40 = vadd.f32 %v910_v36, %v902_v35  ;;  %v1050_v7 = vrot.slane %v955_v33, 6 }
 0xe0e   :  { %1617 = vtanh.f32 %v912_v40 }
 0xe12   :  { %v1616_v41 = vpop.eup %1615 }
 0xe13   :  { %958 = vrot.lane.b32.xlu0 %v1616_v41, %s1950_s29 }
 0xe14   :  { %v1618_v42 = vpop.eup %1617 }
 0xe15   :  { %915 = vrot.lane.b32.xlu1 %v1618_v42, %s1950_s29 }
 0xe85   :  { %v959_v43 = vpop.permute.xlu0 %958 }
 0xe86   :  { %v961_v45 = vmul.f32 %v959_v43, %v941_v4 }
 0xe87   :  { %v916_v47 = vpop.permute.xlu1 %915 }
 0xe88   :  { %v962_v48 = vpack.c.bf16 %v961_v45, %v961_v45  ;;  %v2270_v49 = vmul.f32 %v916_v47, %v901_v26 }
 0xe8a   :  { %v982_v50 = vpack.c.bf16 %v2270_v49, %v2270_v49  ;;  %964 = vrot.lane.b32.xlu2 %v962_v48, %s1962_s26 }
 0xe8c   :  { %984 = vrot.lane.b32.xlu0 %v982_v50, %s1962_s26 }
 0xee4   :  { %v965_v51 = vpop.permute.xlu2 %964 }
 0xee5   :  { %1506 = vmatmul.msk.bf16.vlgmr.msrb.gmra.mxu1 %vm241_vm0, %v965_v51  ;;  %1508 = vmatmul.msk.bf16.vlgmr.msrb.gmra.mxu0 %vm241_vm0, %v965_v51 }
 0xee6   :  { %1251 = vmatpush.bf16.msrb.mxu1 %v2119_v28  ;;  %1319 = vmatpush.bf16.msrb.mxu0 %v2123_v34 }
 0xeea   :  { %1252 = vmatpush.bf16.msrb.mxu1 %v2130_v37  ;;  %1320 = vmatpush.bf16.msrb.mxu0 %v2132_v38 }
 0xefe   :  { %v985_v52 = vpop.permute.xlu0 %984 }
 0xeff   :  { %1507 = vmatmul.msk.bf16.vlgmr.msrb.gmra.mxu3 %vm241_vm0, %v985_v52 }
 0xf00   :  { %1299 = vmatpush.bf16.msrb.mxu3 %v2155_v62 }
 0xf04   :  { %1300 = vmatpush.bf16.msrb.mxu3 %v2158_v63 }
 0xf62   :  { %v978_v46 = vpop.f32.mrf.mxu1  ;;  %v1038_v53 = vpop.f32.mrf.mxu0 }
 0xf63   :  { %v1043_v54 = vrot.slane %v1038_v53, 6  ;;  %v979_v37 = vadd.f32 %v2183_v5, %v978_v46 }
 0xf65   :  { %v1045_v55 = vadd.f32 %v1043_v54, %v2260_v11 }
 0xf67   :  { %1619 = vtanh.f32 %v1045_v55 }
 0xf6a   :  { %v980_v28 = vpop.f32.mrf.mxu1  ;;  %v1040_v56 = vpop.f32.mrf.mxu0 }
 0xf6d   :  { %v1620_v34 = vpop.eup %1619 }
 0xf6e   :  { %1054 = vrot.lane.b32.xlu1 %v1620_v34, %s1950_s29  ;;  %v1047_v63 = vmul.f32 0.5, %v1620_v34 }
 0xf70   :  { %v1048_v59 = vadd.f32 0.5, %v1047_v63 }
 0xf72   :  { %v1052_v8 = vmul.f32 %v1050_v7, %v1048_v59 }
 0xf82   :  { %v998_v38 = vpop.f32.mrf.mxu3 }
 0xf83   :  { %v1002_v57 = vadd.f32 %v998_v38, %v979_v37 }
 0xf85   :  { %1621 = vtanh.f32 %v1002_v57 }
 0xf8a   :  { %v1000_v58 = vpop.f32.mrf.mxu3 }
 0xf8b   :  { %v1622_v62 = vpop.eup %1621 }
 0xf8c   :  { %1008 = vrot.lane.b32.xlu2 %v1622_v62, %s1950_s29  ;;  %v1004_v0 = vmul.f32 0.5, %v1622_v62 }
 0xf8e   :  { %v1005_v2 = vadd.f32 0.5, %v1004_v0 }
 0xf90   :  { %v1006_v12 = vmul.f32 %v1005_v2, %v912_v40 }
 0xfe0   :  { %v1055_v60 = vpop.permute.xlu1 %1054 }
 0xfe1   :  { %v1057_v61 = vmul.f32 %v1055_v60, %v1048_v59 }
 0xfe3   :  { %1059 = vrot.lane.b32.xlu0 %v1057_v61, %s1962_s26 }
 0xfe6   :  { %v1009_v3 = vpop.permute.xlu2 %1008 }
 0xfe7   :  { %v1011_v6 = vmul.f32 %v1009_v3, %v1005_v2 }
 0xfe9   :  { %1013 = vrot.lane.b32.xlu1 %v1011_v6, %s1962_s26 }
0x1055   :  { %v1060_v9 = vpop.permute.xlu0 %1059 }
0x1056   :  { %v1062_v10 = vadd.f32 %v1060_v9, %v1052_v8 }
0x1058   :  { %1623 = vtanh.f32 %v1062_v10  ;;  %v1158_v46 = vrot.slane %v1062_v10, 6 }
0x105b   :  { %v1014_v13 = vpop.permute.xlu1 %1013 }
0x105c   :  { %v1016_v14 = vadd.f32 %v1014_v13, %v1006_v12 }
0x105e   :  { %v1624_v15 = vpop.eup %1623  ;;  %1625 = vtanh.f32 %v1016_v14 }
0x105f   :  { %1065 = vrot.lane.b32.xlu2 %v1624_v15, %s1950_s29 }
0x1064   :  { %v1626_v16 = vpop.eup %1625 }
0x1065   :  { %1019 = vrot.lane.b32.xlu0 %v1626_v16, %s1950_s29 }
0x10b9   :  { %v1066_v17 = vpop.permute.xlu2 %1065 }
0x10ba   :  { %v1068_v18 = vmul.f32 %v1066_v17, %v1048_v59 }
0x10bc   :  { %v1069_v19 = vpack.c.bf16 %v1068_v18, %v1068_v18 }
0x10be   :  { %v1071_v20 = vrot.slane %v1069_v19, 1 }
0x10c0   :  { %1072 = vrot.lane.b32.xlu1 %v1071_v20, %s1962_s26 }
0x10d7   :  { %v1020_v21 = vpop.permute.xlu0 %1019 }
0x10d8   :  { %v2294_v44 = vmul.f32 %v1020_v21, %v1005_v2 }
0x10da   :  { %v1090_v4 = vpack.c.bf16 %v2294_v44, %v2294_v44 }
0x10dc   :  { %1092 = vrot.lane.b32.xlu2 %v1090_v4, %s1962_s26 }
0x1132   :  { %v1073_v23 = vpop.permute.xlu1 %1072 }
0x1133   :  { %1509 = vmatmul.msk.bf16.vlgmr.msrb.gmra.mxu2 %vm241_vm0, %v1073_v23  ;;  %1511 = vmatmul.msk.bf16.vlgmr.msra.gmra.mxu3 %vm241_vm0, %v1073_v23 }
0x1136   :  { %v1093_v24 = vpop.permute.xlu2 %1092 }
0x1137   :  { %1510 = vmatmul.msk.bf16.vlgmr.msra.gmra.mxu1 %vm241_vm0, %v1093_v24 }
0x11b4   :  { %v1106_v25 = vpop.f32.mrf.mxu1 }
0x11b6   :  { %v1086_v26 = vpop.f32.mrf.mxu2  ;;  %v1146_v27 = vpop.f32.mrf.mxu3 }
0x11b7   :  { %v1087_v29 = vadd.f32 %v2183_v5, %v1086_v26  ;;  %v1151_v30 = vrot.slane %v1146_v27, 4 }
0x11b9   :  { %v1110_v31 = vadd.f32 %v1106_v25, %v1087_v29  ;;  %v1153_v32 = vadd.f32 %v1151_v30, %v2260_v11 }
0x11bb   :  { %1627 = vtanh.f32 %v1110_v31 }
0x11bc   :  { %1629 = vtanh.f32 %v1153_v32  ;;  %v1108_v33 = vpop.f32.mrf.mxu1 }
0x11be   :  { %v1088_v35 = vpop.f32.mrf.mxu2  ;;  %v1148_v36 = vpop.f32.mrf.mxu3 }
0x11bf   :  { %v1963_v36 = vmov 0  }
0x11c0   :  { %1568 = vset.pattern.permute.xlu0 %v1963_v36 }
0x11c1   :  { %v1628_v40 = vpop.eup %1627 }
0x11c2   :  { %v1630_v41 = vpop.eup %1629  ;;  %1116 = vrot.lane.b32.xlu1 %v1628_v40, %s1950_s29  ;;  %v1112_v42 = vmul.f32 0.5, %v1628_v40 }
0x11c3   :  { %1162 = vrot.lane.b32.xlu0 %v1630_v41, %s1950_s29  ;;  %v1155_v43 = vmul.f32 0.5, %v1630_v41 }
0x11c4   :  { %v1113_v45 = vadd.f32 0.5, %v1112_v42 }
0x11c5   :  { %v1156_v47 = vadd.f32 0.5, %v1155_v43 }
0x11c6   :  { %v1114_v56 = vmul.f32 %v1113_v45, %v1016_v14 }
0x11c7   :  { %v1160_v53 = vmul.f32 %v1158_v46, %v1156_v47 }
0x1234   :  { %v1117_v48 = vpop.permute.xlu1 %1116 }
0x1235   :  { %v1163_v50 = vpop.permute.xlu0 %1162  ;;  %v1119_v51 = vmul.f32 %v1117_v48, %v1113_v45 }
0x1236   :  { %v1165_v52 = vmul.f32 %v1163_v50, %v1156_v47  ;;  %v458_v50 = vld [vmem:[#allocation2] sm:$0x3] }
0x1237   :  { %1121 = vrot.lane.b32.xlu0 %v1119_v51, %s1962_s26  ;;  %v1964_v51 = vmov 5  }
0x1238   :  { %1167 = vrot.lane.b32.xlu2 %v1165_v52, %s1962_s26 }
0x1292   :  { %v1168_v54 = vpop.permute.xlu2 %1167 }
0x1293   :  { %v1170_v55 = vadd.f32 %v1168_v54, %v1160_v53  ;;  %v1965_v53 = vmov 1  }
0x1294   :  { %1569 = vset.pattern.permute.xlu1 %v1965_v53 }
0x1295   :  { %1631 = vtanh.f32 %v1170_v55  ;;  %v1266_v25 = vrot.slane %v1170_v55, 6 }
0x129b   :  { %v1632_v28 = vpop.eup %1631 }
0x129c   :  { %1173 = vrot.lane.b32.xlu1 %v1632_v28, %s1950_s29 }
0x12a9   :  { %v1122_v34 = vpop.permute.xlu0 %1121 }
0x12aa   :  { %v1124_v37 = vadd.f32 %v1122_v34, %v1114_v56 }
0x12ac   :  { %1633 = vtanh.f32 %v1124_v37 }
0x12b2   :  { %v1634_v38 = vpop.eup %1633 }
0x12b3   :  { %1127 = vrot.lane.b32.xlu2 %v1634_v38, %s1950_s29 }
0x130d   :  { %v1128_v57 = vpop.permute.xlu2 %1127 }
0x130e   :  { %v1174_v58 = vpop.permute.xlu1 %1173  ;;  %v2310_v62 = vmul.f32 %v1128_v57, %v1113_v45  ;;  %v1966_v57 = vmov 3  }
0x130f   :  { %v1176_v63 = vmul.f32 %v1174_v58, %v1156_v47  ;;  %v1967_v58 = vmov 6  }
0x1310   :  { %v1198_v59 = vpack.c.bf16 %v2310_v62, %v2310_v62 }
0x1311   :  { %v1177_v60 = vpack.c.bf16 %v1176_v63, %v1176_v63  ;;  %v1968_v63 = vmov 2  }
0x1312   :  { %1200 = vrot.lane.b32.xlu1 %v1198_v59, %s1962_s26  ;;  %1570 = vset.pattern.permute.xlu2 %v1968_v63 }
0x1313   :  { %v1179_v61 = vrot.slane %v1177_v60, 2  ;;  %v1969_v60 = vmov 7  }
0x1315   :  { %1180 = vrot.lane.b32.xlu0 %v1179_v61, %s1962_s26 }
0x1384   :  { %v1201_v0 = vpop.permute.xlu1 %1200 }
0x1385   :  { %1513 = vmatmul.msk.bf16.vlgmr.msra.gmra.mxu2 %vm241_vm0, %v1201_v0 }
0x1387   :  { %v1181_v2 = vpop.permute.xlu0 %1180 }
0x1388   :  { %1512 = vmatmul.msk.bf16.vlgmr.msra.gmra.mxu0 %vm241_vm0, %v1181_v2  ;;  %1514 = vmatmul.msk.bf16.vlgmr.msrb.gmra.mxu1 %vm241_vm0, %v1181_v2  ;;  %v1970_v2 = vmov 4  }
0x1405   :  { %v1194_v3 = vpop.f32.mrf.mxu0  ;;  %v1254_v6 = vpop.f32.mrf.mxu1 }
0x1406   :  { %v1259_v7 = vrot.slane %v1254_v6, 2  ;;  %v1195_v8 = vadd.f32 %v2183_v5, %v1194_v3 }
0x1408   :  { %v1261_v9 = vadd.f32 %v1259_v7, %v2260_v11  ;;  %v1214_v10 = vpop.f32.mrf.mxu2 }
0x1409   :  { %v1218_v12 = vadd.f32 %v1214_v10, %v1195_v8  ;;  %v1544_v10 = vld [vmem:[%s2374_s14 + $0x8] sm:$0xff] }
0x140a   :  { %1635 = vtanh.f32 %v1261_v9  ;;  %1386 = vmatpush.bf16.msrb.mxu2 %v1544_v10 }
0x140b   :  { %1637 = vtanh.f32 %v1218_v12 }
0x140d   :  { %v1196_v13 = vpop.f32.mrf.mxu0  ;;  %v1256_v14 = vpop.f32.mrf.mxu1 }
0x140e   :  { %v1543_v13 = vld [vmem:[%s2374_s14] sm:$0xff] }
0x140f   :  { %1387 = vmatpush.bf16.msrb.mxu2 %v1543_v13 }
0x1410   :  { %v1636_v15 = vpop.eup %1635  ;;  %v1216_v16 = vpop.f32.mrf.mxu2 }
0x1411   :  { %v1638_v17 = vpop.eup %1637  ;;  %1270 = vrot.lane.b32.xlu2 %v1636_v15, %s1950_s29  ;;  %v1263_v18 = vmul.f32 0.5, %v1636_v15 }
0x1412   :  { %1224 = vrot.lane.b32.xlu0 %v1638_v17, %s1950_s29  ;;  %v1220_v11 = vmul.f32 0.5, %v1638_v17 }
0x1413   :  { %v1264_v19 = vadd.f32 0.5, %v1263_v18 }
0x1414   :  { %v1221_v4 = vadd.f32 0.5, %v1220_v11 }
0x1415   :  { %v1268_v26 = vmul.f32 %v1266_v25, %v1264_v19 }
0x1416   :  { %v1222_v29 = vmul.f32 %v1221_v4, %v1124_v37 }
0x146b   :  { %v1271_v20 = vpop.permute.xlu2 %1270 }
0x146c   :  { %v1273_v21 = vmul.f32 %v1271_v20, %v1264_v19 }
0x146e   :  { %1275 = vrot.lane.b32.xlu1 %v1273_v21, %s1962_s26 }
0x1484   :  { %v1225_v23 = vpop.permute.xlu0 %1224 }
0x1485   :  { %v1227_v24 = vmul.f32 %v1225_v23, %v1221_v4 }
0x1487   :  { %1229 = vrot.lane.b32.xlu2 %v1227_v24, %s1962_s26 }
0x14e0   :  { %v1276_v27 = vpop.permute.xlu1 %1275 }
0x14e1   :  { %v1278_v30 = vadd.f32 %v1276_v27, %v1268_v26  ;;  %v1230_v31 = vpop.permute.xlu2 %1229 }
0x14e2   :  { %v1232_v32 = vadd.f32 %v1230_v31, %v1222_v29 }
0x14e3   :  { %1639 = vtanh.f32 %v1278_v30 }
0x14e4   :  { %1641 = vtanh.f32 %v1232_v32 }
0x14e9   :  { %v1640_v33 = vpop.eup %1639 }
0x14ea   :  { %v1642_v35 = vpop.eup %1641  ;;  %1281 = vrot.lane.b32.xlu0 %v1640_v33, %s1950_s29 }
0x14eb   :  { %1235 = vrot.lane.b32.xlu1 %v1642_v35, %s1950_s29 }
0x155c   :  { %v1282_v40 = vpop.permute.xlu0 %1281 }
0x155d   :  { %v1284_v41 = vmul.f32 %v1282_v40, %v1264_v19  ;;  %v1236_v42 = vpop.permute.xlu1 %1235 }
0x155e   :  { %v2327_v43 = vmul.f32 %v1236_v42, %v1221_v4 }
0x155f   :  { %v1285_v45 = vpack.c.bf16 %v1284_v41, %v1284_v41 }
0x1560   :  { %v1306_v47 = vpack.c.bf16 %v2327_v43, %v2327_v43 }
0x1561   :  { %v1287_v48 = vrot.slane %v1285_v45, 3 }
0x1562   :  { %1308 = vrot.lane.b32.xlu0 %v1306_v47, %s1962_s26 }
0x1563   :  { %1288 = vrot.lane.b32.xlu2 %v1287_v48, %s1962_s26 }
0x156a   :  { %596 = vperm.xlu0 %1568, %v458_v50  }
0x1572   :  { %1573 = vset.pattern.permute.xlu0 %v1964_v51 }
0x1573   :  { %1132 = vperm.xlu0 %1573, %v458_v50  }
0x157b   :  { %1576 = vset.pattern.permute.xlu0 %v1969_v60 }
0x15bd   :  { %v1289_v52 = vpop.permute.xlu2 %1288 }
0x15be   :  { %1515 = vmatmul.msk.bf16.vlgmr.msrb.gmra.mxu3 %vm241_vm0, %v1289_v52 }
0x15d4   :  { %v1309_v46 = vpop.permute.xlu0 %1308 }
0x15d5   :  { %1516 = vmatmul.msk.bf16.vlgmr.msrb.gmra.mxu0 %vm241_vm0, %v1309_v46 }
0x15dc   :  { %v597_v14 = vpop.permute.xlu0 %596 }
0x15dd   :  { %v599_v17 = vmul.f32 %v597_v14, %v2193_v39 }
0x15e5   :  { %v1133_v25 = vpop.permute.xlu0 %1132 }
0x15e6   :  { %v1135_v27 = vmul.f32 %v1133_v25, %v2310_v62 }
0x1641   :  { %v1302_v54 = vpop.f32.mrf.mxu3 }
0x1642   :  { %v1303_v28 = vadd.f32 %v2183_v5, %v1302_v54 }
0x1649   :  { %v1304_v55 = vpop.f32.mrf.mxu3 }
0x1652   :  { %v1322_v56 = vpop.f32.mrf.mxu0 }
0x1653   :  { %v1326_v34 = vadd.f32 %v1322_v56, %v1303_v28 }
0x1655   :  { %1643 = vtanh.f32 %v1326_v34 }
0x165a   :  { %v1324_v37 = vpop.f32.mrf.mxu0 }
0x165b   :  { %v1644_v38 = vpop.eup %1643 }
0x165c   :  { %1332 = vrot.lane.b32.xlu1 %v1644_v38, %s1950_s29  ;;  %v1328_v59 = vmul.f32 0.5, %v1644_v38 }
0x165e   :  { %v1329_v5 = vadd.f32 0.5, %v1328_v59 }
0x1660   :  { %v1330_v3 = vmul.f32 %v1329_v5, %v1232_v32 }
0x1664   :  { %704 = vperm.xlu1 %1569, %v458_v50  }
0x166c   :  { %1571 = vset.pattern.permute.xlu1 %v1966_v57 }
0x166d   :  { %920 = vperm.xlu1 %1571, %v458_v50  }
0x1675   :  { %1574 = vset.pattern.permute.xlu1 %v1967_v58 }
0x1676   :  { %1240 = vperm.xlu1 %1574, %v458_v50  }
0x167e   :  { %1575 = vset.pattern.permute.xlu1 %v1969_v60 }
0x167f   :  { %1348 = vperm.xlu1 %1575, %v458_v50  }
0x16ce   :  { %v1333_v61 = vpop.permute.xlu1 %1332 }
0x16cf   :  { %v1335_v0 = vmul.f32 %v1333_v61, %v1329_v5 }
0x16d1   :  { %1337 = vrot.lane.b32.xlu2 %v1335_v0, %s1962_s26 }
0x16d6   :  { %v705_v9 = vpop.permute.xlu1 %704 }
0x16d7   :  { %v707_v16 = vmul.f32 %v705_v9, %v2220_v22 }
0x16d9   :  { %812 = vperm.xlu2 %1570, %v458_v50   ;;  %v708_v19 = vadd.f32 %v707_v16, %v599_v17 }
0x16df   :  { %v921_v15 = vpop.permute.xlu1 %920 }
0x16e0   :  { %v923_v11 = vmul.f32 %v921_v15, %v2270_v49 }
0x16e1   :  { %1572 = vset.pattern.permute.xlu2 %v1970_v2 }
0x16e2   :  { %1024 = vperm.xlu2 %1572, %v458_v50  }
0x16e8   :  { %v1241_v23 = vpop.permute.xlu1 %1240 }
0x16e9   :  { %v1243_v39 = vmul.f32 %v1241_v23, %v2327_v43 }
0x16f1   :  { %v1349_v30 = vpop.permute.xlu1 %1348 }
0x172b   :  { %v1338_v6 = vpop.permute.xlu2 %1337 }
0x172c   :  { %v1340_v7 = vadd.f32 %v1338_v6, %v1330_v3 }
0x172e   :  { %1645 = vtanh.f32 %v1340_v7 }
0x1733   :  { %v813_v12 = vpop.permute.xlu2 %812 }
0x1734   :  { %v1646_v8 = vpop.eup %1645  ;;  %v815_v18 = vmul.f32 %v813_v12, %v2243_v1 }
0x1735   :  { %1343 = vrot.lane.b32.xlu2 %v1646_v8, %s1950_s29 }
0x1736   :  { %v816_v21 = vadd.f32 %v815_v18, %v708_v19 }
0x1738   :  { %v924_v24 = vadd.f32 %v923_v11, %v816_v21 }
0x173c   :  { %v1025_v20 = vpop.permute.xlu2 %1024 }
0x173d   :  { %v1027_v4 = vmul.f32 %v1025_v20, %v2294_v44  ;;  %v1582_v44 = vld [vmem:[%s2375_s15] ss:$0 sm:$0xff] }
0x173f   :  { %v1028_v26 = vadd.f32 %v1027_v4, %v924_v24 }
0x1741   :  { %v1136_v29 = vadd.f32 %v1135_v27, %v1028_v26 }
0x1743   :  { %v1244_v1 = vadd.f32 %v1243_v39, %v1136_v29 }
0x178f   :  { %v1344_v22 = vpop.permute.xlu2 %1343 }
0x1790   :  { %v1346_v31 = vmul.f32 %v1344_v22, %v1329_v5 }
0x1792   :  { %v1351_v32 = vmul.f32 %v1349_v30, %v1346_v31 }
0x1794   :  { %v1352_v33 = vadd.f32 %v1351_v32, %v1244_v1 }
0x1796   :  { %v1353_v35 = vpack.c.bf16 %v1352_v33, %v1352_v33 }
0x1798   :  { %1363 = vrot.lane.b32.xlu2 %v1353_v35, %s1962_s26 }
0x17f2   :  { %v1364_v49 = vpop.permute.xlu2 %1363 }
0x17f3   :  { %1525 = vmatmul.msk.bf16.vlgmr.msrb.gmra.mxu2 %vm241_vm0, %v1364_v49 }
0x1876   :  { %v1389_v62 = vpop.f32.mrf.mxu2 }
0x1877   :  { %v1390_v36 = vadd.f32 %v1582_v44, %v1389_v62 }
0x1879   :  { %1394 = vst.msk [vmem:[#allocation20] sm:$0x3] %vm1393_vm2, %v1390_v36 }
0x187a   :  { %1405 = dma.vmem_to_hbm [thread:$0]  %s1401_s17, 32, %s1403_s8, [#allocation4]  }
0x187e   :  { %v1391_v40 = vpop.f32.mrf.mxu2 }
0x187f   :  { %1947 = dma.done.wait [#allocation4], 32  }
0x1880   :  { %1948 = vsyncadd [#allocation4], 4294967264 }
0x1881   :  { %1410 = vsyncpa [#allocation3], 1 }
0x1882   :  { %1411 = vsyncpa [#allocation6], 1 }
0x1883   :  { %1412 = vsyncpa [#allocation9], 1 }
0x1884   :  { %1413 = vsyncpa [#allocation12], 1 }
0x1885   :  { %1414 = vsyncpa [#allocation15], 1 }
0x1886   :  { %1415 = vsyncpa [#allocation18], 1 }
0x1887   :  { %1416 = vsyncpa [#allocation4], 1 }

</bundles_post_ra>
